<compile_context>
chip_gen: v6e
topology: v6e:2x2x1
jax: 0.10.0
libtpu: 0.0.40
codegen_flags: <defaults>
</compile_context>

<pallas_src>
import functools

import jax
import jax.numpy as jnp
from jax.experimental import pallas as pl
from jax.experimental.pallas import tpu as pltpu

BN_EPS = 1e-5     # nn.BatchNorm1d default eps
L2_EPS = 1e-12    # F.normalize default eps
_SQRT_2_OVER_PI = 0.7978845608028654
_INV_SQRT2 = 0.7071067811865476


def _gelu(x, approx):
    if approx:
        # tanh approximation -> transcendental on the EUP slot (VALU relief).
        return 0.5 * x * (1.0 + jnp.tanh(_SQRT_2_OVER_PI * (x + 0.044715 * x * x * x)))
    # exact erf formulation == nn.GELU() default
    return 0.5 * x * (1.0 + jax.lax.erf(x * _INV_SQRT2))


def _round_up(v, m):
    return ((v + m - 1) // m) * m


def _pad_to(a, tgt_shape):
    pads = [(0, t - s) for s, t in zip(a.shape, tgt_shape)]
    if all(p == (0, 0) for p in pads):
        return a
    return jnp.pad(a, pads)


def _vmem_capacity_bytes():
    """Physical per-core VMEM (64 MiB on v7x, 128 MiB on v5e/v6e)."""
    try:
        cap = int(getattr(pltpu.get_tpu_info(), "vmem_capacity_bytes", 0))
        if cap > 0:
            return cap
    except Exception:
        pass
    return 64 * 1024 * 1024   # conservative fallback (= v7x)


# --------------------------- Pallas kernel ------------------------------
def projector_kernel(x_ref,
                     w1_ref, g1_ref, be1_ref,
                     g2_ref, be2_ref,
                     g3_ref, be3_ref,
                     w2_hbm, w3_hbm, w4_hbm,          # memory_space=pl.ANY (HBM)
                     o_ref,
                     w2_vmem, w3_vmem, w4_vmem, dma_sems,   # scratch
                     *, n_valid, mm_dtype, gelu_approx):
    # Kick off w2/w3/w4 HBM->VMEM DMAs immediately so they overlap layer-1
    # (and layer-2) compute instead of serializing ahead of the body.
    cp_w2 = pltpu.make_async_copy(w2_hbm, w2_vmem, dma_sems.at[0])
    cp_w3 = pltpu.make_async_copy(w3_hbm, w3_vmem, dma_sems.at[1])
    cp_w4 = pltpu.make_async_copy(w4_hbm, w4_vmem, dma_sems.at[2])
    cp_w2.start()
    cp_w3.start()
    cp_w4.start()

    m_pad = x_ref.shape[0]
    inv_n = 1.0 / float(n_valid)

    x = x_ref[...].astype(jnp.float32)

    # --- L2Norm(dim=1): x / max(||x||_2, eps) ---
    nrm = jnp.sqrt(jnp.sum(x * x, axis=-1, keepdims=True))
    x = x / jnp.maximum(nrm, L2_EPS)

    # Row-validity mask: only needed when the batch was padded; BN statistics
    # must only see the n_valid real rows.  Built once, reused by layers 2/3.
    if n_valid != m_pad:
        row_mask = (jax.lax.broadcasted_iota(jnp.int32, (m_pad, 1), 0)
                    < n_valid).astype(jnp.float32)
    else:
        row_mask = None

    def mlp_layer(h, w, g_ref, be_ref, need_mask):
        # Linear (bias intentionally dropped: exactly cancelled by the
        # training-mode BN mean subtraction below).
        h = jnp.dot(h.astype(mm_dtype), w, preferred_element_type=jnp.float32)

        # BatchNorm1d (training mode, biased variance), folded into one
        # scale/shift from one-pass sum / sum-of-squares statistics.
        hm = h * row_mask if (need_mask and row_mask is not None) else h
        mu = jnp.sum(hm, axis=0, keepdims=True) * inv_n
        msq = jnp.sum(hm * hm, axis=0, keepdims=True) * inv_n
        var = jnp.maximum(msq - mu * mu, 0.0)
        scale = g_ref[...] * jax.lax.rsqrt(var + BN_EPS)
        shift = be_ref[...] - mu * scale

        return _gelu(h * scale + shift, gelu_approx)

    # Padded rows of x are exactly zero and stay zero through the bias-free
    # first Linear, so layer 1 needs no stats mask.
    h = mlp_layer(x, w1_ref[...], g1_ref, be1_ref, need_mask=False)

    cp_w2.wait()
    h = mlp_layer(h, w2_vmem[...], g2_ref, be2_ref, need_mask=True)

    cp_w3.wait()
    h = mlp_layer(h, w3_vmem[...], g3_ref, be3_ref, need_mask=True)

    cp_w4.wait()
    # Final Linear, bias=False.
    o_ref[...] = jnp.dot(h.astype(mm_dtype), w4_vmem[...],
                         preferred_element_type=jnp.float32).astype(o_ref.dtype)


# --------------------------- param preparation --------------------------
def prepare_params(params, *, use_bf16_matmul=True):
    """Pad + cast the weights ONCE (hoisted out of the per-call path)."""
    ft, hidden = params["w1"].shape
    bottleneck = params["w4"].shape[1]
    ft_pad = _round_up(ft, 128)      # lane-dense K for the first matmul
    h_pad = _round_up(hidden, 128)
    b_pad = _round_up(bottleneck, 128)   # lane-dense (unmasked) output stores

    # bf16 weights: half the weight DMA bytes, full-rate MXU on all gens.
    mm_dtype = jnp.bfloat16 if use_bf16_matmul else jnp.float32
    f32 = jnp.float32

    def vec(v, dim_pad):
        return _pad_to(jnp.asarray(v, f32).reshape(1, -1), (1, dim_pad))

    # NOTE: hidden-layer biases (b1/b2/b3) are intentionally NOT prepared:
    # they are exactly cancelled by training-mode BatchNorm.
    return {
        "_prepared": True,
        "dims": (int(ft), int(hidden), int(bottleneck)),
        "pads": (ft_pad, h_pad, b_pad),
        "mm_dtype": mm_dtype,
        "w1": _pad_to(jnp.asarray(params["w1"], f32), (ft_pad, h_pad)).astype(mm_dtype),
        "w2": _pad_to(jnp.asarray(params["w2"], f32), (h_pad, h_pad)).astype(mm_dtype),
        "w3": _pad_to(jnp.asarray(params["w3"], f32), (h_pad, h_pad)).astype(mm_dtype),
        "w4": _pad_to(jnp.asarray(params["w4"], f32), (h_pad, b_pad)).astype(mm_dtype),
        "g1": vec(params["g1"], h_pad), "be1": vec(params["be1"], h_pad),
        "g2": vec(params["g2"], h_pad), "be2": vec(params["be2"], h_pad),
        "g3": vec(params["g3"], h_pad), "be3": vec(params["be3"], h_pad),
    }


# ------------------------------ wrapper ---------------------------------
def projector(x, params, *, use_bf16_matmul=True, gelu_approx=True):
    """x: [N, ft_dim] float32 -> [N, bottleneck_dim] float32."""
    if not (isinstance(params, dict) and params.get("_prepared", False)):
        params = prepare_params(params, use_bf16_matmul=use_bf16_matmul)

    ft, hidden, bottleneck = params["dims"]
    ft_pad, h_pad, b_pad = params["pads"]
    mm_dtype = params["mm_dtype"]

    n = x.shape[0]
    assert x.shape[1] == ft, f"expected ft_dim={ft}, got {x.shape[1]}"
    m_pad = _round_up(n, 16)                 # bf16 sublane packing (16, 128)
    xp = _pad_to(x.astype(jnp.float32), (m_pad, ft_pad))

    # ---- VMEM budget (v7x = 64 MiB physical; v5e/v6e = 128 MiB) ----
    itm = jnp.dtype(mm_dtype).itemsize
    max_dim = max(ft_pad, h_pad, b_pad)
    resident = (m_pad * ft_pad * 4                                 # x (f32)
                + ft_pad * h_pad * itm                             # w1 (auto VMEM)
                + 6 * h_pad * 4                                    # g/be vectors
                + (2 * h_pad * h_pad + h_pad * b_pad) * itm        # w2/w3/w4 scratch
                + m_pad * b_pad * 4)                               # output
    act_headroom = 6 * m_pad * max_dim * 4 + (4 << 20)             # f32 temps + margin
    vmem_needed = resident + act_headroom
    cap = _vmem_capacity_bytes()
    budget = cap - (6 << 20)                                       # leave margin for XLA
    if vmem_needed > budget:
        # TODO(synk): add a batch-tiled (grid over M) two-pass-BN path and a
        # 2-TensorCore split for v7x large-batch throughput.
        raise ValueError(
            f"Projector batch too large for the all-VMEM-resident kernel: need "
            f"~{vmem_needed >> 20} MiB, VMEM budget {budget >> 20} MiB. "
            f"Reduce the batch size.")
    vmem_limit = int(min(budget, max(vmem_needed, 32 << 20)))

    kernel = functools.partial(projector_kernel, n_valid=n,
                               mm_dtype=mm_dtype, gelu_approx=gelu_approx)

    args = (xp,
            params["w1"], params["g1"], params["be1"],
            params["g2"], params["be2"],
            params["g3"], params["be3"],
            params["w2"], params["w3"], params["w4"])

    in_specs = ([pl.BlockSpec(memory_space=pltpu.MemorySpace.VMEM)] * 8
                + [pl.BlockSpec(memory_space=pl.ANY)] * 3)          # w2/w3/w4 stay in HBM

    out = pl.pallas_call(
        kernel,
        out_shape=jax.ShapeDtypeStruct((m_pad, b_pad), jnp.float32),
        in_specs=in_specs,
        out_specs=pl.BlockSpec(memory_space=pltpu.MemorySpace.VMEM),
        scratch_shapes=[
            pltpu.VMEM((h_pad, h_pad), mm_dtype),     # w2 landing buffer
            pltpu.VMEM((h_pad, h_pad), mm_dtype),     # w3 landing buffer
            pltpu.VMEM((h_pad, b_pad), mm_dtype),     # w4 landing buffer
            pltpu.SemaphoreType.DMA((3,)),
        ],
        compiler_params=pltpu.CompilerParams(vmem_limit_bytes=vmem_limit),
    )(*args)

    return out[:n, :bottleneck]


# ---------------- pure-JAX reference (PyTorch semantics) ----------------
def projector_reference(x, p, mm_dtype=jnp.float32, gelu_approx=False):
    x = x / jnp.maximum(jnp.sqrt(jnp.sum(x * x, axis=1, keepdims=True)), L2_EPS)

    def mlp(h, w, b, g, be):
        h = jnp.dot(h.astype(mm_dtype), w.astype(mm_dtype),
                    preferred_element_type=jnp.float32) + b
        mu = h.mean(axis=0, keepdims=True)
        var = ((h - mu) ** 2).mean(axis=0, keepdims=True)
        h = (h - mu) / jnp.sqrt(var + BN_EPS) * g + be
        return _gelu(h, gelu_approx)

    h = mlp(x, p["w1"], p["b1"], p["g1"], p["be1"])
    h = mlp(h, p["w2"], p["b2"], p["g2"], p["be2"])
    h = mlp(h, p["w3"], p["b3"], p["g3"], p["be3"])
    return jnp.dot(h.astype(mm_dtype), p["w4"].astype(mm_dtype),
                   preferred_element_type=jnp.float32)


def make_params(key, ft_dim, hidden_dim, bottleneck_dim):
    ks = jax.random.split(key, 16)
    dims = [(ft_dim, hidden_dim), (hidden_dim, hidden_dim), (hidden_dim, hidden_dim)]
    p = {}
    for li, (din, dout) in enumerate(dims, start=1):
        k0, k1, k2, k3 = ks[4 * (li - 1):4 * li]
        p[f"w{li}"] = 0.05 * jax.random.normal(k0, (din, dout), jnp.float32)
        p[f"b{li}"] = 0.01 * jax.random.normal(k1, (1, dout), jnp.float32)
        p[f"g{li}"] = 1.0 + 0.1 * jax.random.normal(k2, (1, dout), jnp.float32)
        p[f"be{li}"] = 0.05 * jax.random.normal(k3, (1, dout), jnp.float32)
    p["w4"] = 0.05 * jax.random.normal(ks[12], (hidden_dim, bottleneck_dim), jnp.float32)
    return p


def _check(key, n, ft, hidden, bottleneck):
    k_par, k_x = jax.random.split(key)
    params = make_params(k_par, ft, hidden, bottleneck)
    x = jax.random.normal(k_x, (n, ft), jnp.float32)

    ref_f32_exact = projector_reference(x, params, mm_dtype=jnp.float32,
                                        gelu_approx=False)
    ref_bf16_tanh = projector_reference(x, params, mm_dtype=jnp.bfloat16,
                                        gelu_approx=True)

    # Default fast path: bf16 MXU matmuls, tanh GELU, prepared (pre-padded,
    # pre-cast) weights reused across calls.
    prep_bf16 = prepare_params(params, use_bf16_matmul=True)
    out = jax.block_until_ready(projector(x, prep_bf16))
    assert out.shape == (n, bottleneck)
    # Tight check vs a reference using the same matmul dtype + GELU mode
    # (verifies the bias-drop / BN-fold / masked-stats / DMA-overlap rewrite).
    err_b = float(jnp.max(jnp.abs(out - ref_bf16_tanh)))
    assert jnp.allclose(out, ref_bf16_tanh, atol=1e-3, rtol=1e-3), \
        f"bf16-ref mismatch {err_b}"
    # Loose check vs the exact-erf f32 PyTorch-semantics reference (covers the
    # bf16 matmul + tanh-GELU deviation jointly).
    err_f = float(jnp.max(jnp.abs(out - ref_f32_exact)))
    assert jnp.allclose(out, ref_f32_exact, atol=5e-2, rtol=5e-2), \
        f"f32-ref mismatch {err_f}"

    # Exact-parity path: f32 matmuls + exact erf GELU.
    prep_f32 = prepare_params(params, use_bf16_matmul=False)
    out_f32 = jax.block_until_ready(projector(x, prep_f32, gelu_approx=False))
    err_ff = float(jnp.max(jnp.abs(out_f32 - ref_f32_exact)))
    assert jnp.allclose(out_f32, ref_f32_exact, atol=3e-2, rtol=3e-2), \
        f"f32 path mismatch {err_ff}"


if __name__ == "__main__":
    key = jax.random.PRNGKey(0)
    k1, k2 = jax.random.split(key)
    # Deliberately unaligned shapes: exercises batch/feature padding + masked BN stats.
    _check(k1, n=12, ft=96, hidden=256, bottleneck=64)
    # Lane/sublane-aligned shapes: padding-free / no-mask path.
    _check(k2, n=16, ft=128, hidden=256, bottleneck=128)
    print("KERNEL_OK")
</pallas_src>

<mosaic_0001>
module attributes {stable_mosaic.version = 11 : i64} {
  func.func @projector_kernel(%arg0: memref<16x128xf32, #tpu.memory_space<vmem>>, %arg1: memref<128x256xbf16, #tpu.memory_space<vmem>>, %arg2: memref<1x256xf32, #tpu.memory_space<vmem>>, %arg3: memref<1x256xf32, #tpu.memory_space<vmem>>, %arg4: memref<1x256xf32, #tpu.memory_space<vmem>>, %arg5: memref<1x256xf32, #tpu.memory_space<vmem>>, %arg6: memref<1x256xf32, #tpu.memory_space<vmem>>, %arg7: memref<1x256xf32, #tpu.memory_space<vmem>>, %arg8: memref<256x256xbf16, #tpu.memory_space<any>>, %arg9: memref<256x256xbf16, #tpu.memory_space<any>>, %arg10: memref<256x128xbf16, #tpu.memory_space<any>>, %arg11: memref<16x128xf32, #tpu.memory_space<vmem>>, %arg12: memref<256x256xbf16, #tpu.memory_space<vmem>>, %arg13: memref<256x256xbf16, #tpu.memory_space<vmem>>, %arg14: memref<256x128xbf16, #tpu.memory_space<vmem>>, %arg15: memref<3x!tpu.dma_semaphore, #tpu.memory_space<semaphore_mem>>) attributes {dimension_semantics = [], scalar_prefetch = 0 : i64, scratch_operands = 4 : i64, tpu.core_type = #tpu.core_type<tc>} {
    %c0_i32 = arith.constant 0 : i32
    %0 = tpu.memref_slice %arg15[%c0_i32] : memref<3x!tpu.dma_semaphore, #tpu.memory_space<semaphore_mem>> -> memref<1x!tpu.dma_semaphore, #tpu.memory_space<semaphore_mem>>
    %1 = tpu.memref_squeeze %0 : memref<1x!tpu.dma_semaphore, #tpu.memory_space<semaphore_mem>> -> memref<!tpu.dma_semaphore, #tpu.memory_space<semaphore_mem>>
    tpu.enqueue_dma source(%arg8 : memref<256x256xbf16, #tpu.memory_space<any>>) target(%arg12 : memref<256x256xbf16, #tpu.memory_space<vmem>>) target_semaphore(%1 : memref<!tpu.dma_semaphore, #tpu.memory_space<semaphore_mem>>)
    %c1_i32 = arith.constant 1 : i32
    %2 = tpu.memref_slice %arg15[%c1_i32] : memref<3x!tpu.dma_semaphore, #tpu.memory_space<semaphore_mem>> -> memref<1x!tpu.dma_semaphore, #tpu.memory_space<semaphore_mem>>
    %3 = tpu.memref_squeeze %2 : memref<1x!tpu.dma_semaphore, #tpu.memory_space<semaphore_mem>> -> memref<!tpu.dma_semaphore, #tpu.memory_space<semaphore_mem>>
    tpu.enqueue_dma source(%arg9 : memref<256x256xbf16, #tpu.memory_space<any>>) target(%arg13 : memref<256x256xbf16, #tpu.memory_space<vmem>>) target_semaphore(%3 : memref<!tpu.dma_semaphore, #tpu.memory_space<semaphore_mem>>)
    %c2_i32 = arith.constant 2 : i32
    %4 = tpu.memref_slice %arg15[%c2_i32] : memref<3x!tpu.dma_semaphore, #tpu.memory_space<semaphore_mem>> -> memref<1x!tpu.dma_semaphore, #tpu.memory_space<semaphore_mem>>
    %5 = tpu.memref_squeeze %4 : memref<1x!tpu.dma_semaphore, #tpu.memory_space<semaphore_mem>> -> memref<!tpu.dma_semaphore, #tpu.memory_space<semaphore_mem>>
    tpu.enqueue_dma source(%arg10 : memref<256x128xbf16, #tpu.memory_space<any>>) target(%arg14 : memref<256x128xbf16, #tpu.memory_space<vmem>>) target_semaphore(%5 : memref<!tpu.dma_semaphore, #tpu.memory_space<semaphore_mem>>)
    %c0 = arith.constant 0 : index
    %c0_0 = arith.constant 0 : index
    %6 = vector.load %arg0[%c0, %c0_0] : memref<16x128xf32, #tpu.memory_space<vmem>>, vector<16x128xf32>
    %7 = arith.mulf %6, %6 : vector<16x128xf32>
    %cst = arith.constant dense<0.000000e+00> : vector<16xf32>
    %8 = vector.multi_reduction <add>, %7, %cst [1] : vector<16x128xf32> to vector<16xf32>
    %9 = vector.shape_cast %8 : vector<16xf32> to vector<16x1xf32>
    %10 = math.sqrt %9 : vector<16x1xf32>
    %cst_1 = arith.constant 9.99999996E-13 : f32
    %11 = vector.broadcast %cst_1 : f32 to vector<16x1xf32>
    %12 = arith.maximumf %10, %11 : vector<16x1xf32>
    %13 = vector.broadcast %12 : vector<16x1xf32> to vector<16x128xf32>
    %14 = arith.divf %6, %13 : vector<16x128xf32>
    %15 = tpu.iota {dimensions = array<i32: 0>} : vector<16x1xi32>
    %c12_i32 = arith.constant 12 : i32
    %16 = vector.broadcast %c12_i32 : i32 to vector<16x1xi32>
    %17 = arith.cmpi slt, %15, %16 : vector<16x1xi32>
    %18 = arith.extui %17 : vector<16x1xi1> to vector<16x1xi32>
    %19 = arith.sitofp %18 : vector<16x1xi32> to vector<16x1xf32>
    %c0_2 = arith.constant 0 : index
    %c0_3 = arith.constant 0 : index
    %20 = vector.load %arg1[%c0_2, %c0_3] : memref<128x256xbf16, #tpu.memory_space<vmem>>, vector<128x256xbf16>
    %21 = arith.truncf %14 : vector<16x128xf32> to vector<16x128xbf16>
    %cst_4 = arith.constant dense<0.000000e+00> : vector<16x256xf32>
    %22 = tpu.matmul %21, %20, %cst_4 {dimension_numbers = #tpu.dot_dimension_numbers<[1], [0], [0], [1], [0, 0, 1, 1], [], []>} : vector<16x128xbf16>, vector<128x256xbf16>, vector<16x256xf32> -> vector<16x256xf32>
    %cst_5 = arith.constant dense<0.000000e+00> : vector<256xf32>
    %23 = vector.multi_reduction <add>, %22, %cst_5 [0] : vector<16x256xf32> to vector<256xf32>
    %24 = vector.shape_cast %23 : vector<256xf32> to vector<1x256xf32>
    %cst_6 = arith.constant 0.0833333358 : f32
    %25 = vector.broadcast %cst_6 : f32 to vector<1x256xf32>
    %26 = arith.mulf %24, %25 : vector<1x256xf32>
    %27 = arith.mulf %22, %22 : vector<16x256xf32>
    %cst_7 = arith.constant dense<0.000000e+00> : vector<256xf32>
    %28 = vector.multi_reduction <add>, %27, %cst_7 [0] : vector<16x256xf32> to vector<256xf32>
    %29 = vector.shape_cast %28 : vector<256xf32> to vector<1x256xf32>
    %cst_8 = arith.constant 0.0833333358 : f32
    %30 = vector.broadcast %cst_8 : f32 to vector<1x256xf32>
    %31 = arith.mulf %29, %30 : vector<1x256xf32>
    %32 = arith.mulf %26, %26 : vector<1x256xf32>
    %33 = arith.subf %31, %32 : vector<1x256xf32>
    %cst_9 = arith.constant 0.000000e+00 : f32
    %34 = vector.broadcast %cst_9 : f32 to vector<1x256xf32>
    %35 = arith.maximumf %33, %34 : vector<1x256xf32>
    %c0_10 = arith.constant 0 : index
    %c0_11 = arith.constant 0 : index
    %36 = vector.load %arg2[%c0_10, %c0_11] : memref<1x256xf32, #tpu.memory_space<vmem>>, vector<1x256xf32>
    %cst_12 = arith.constant 9.99999974E-6 : f32
    %37 = vector.broadcast %cst_12 : f32 to vector<1x256xf32>
    %38 = arith.addf %35, %37 : vector<1x256xf32>
    %39 = math.rsqrt %38 : vector<1x256xf32>
    %40 = arith.mulf %36, %39 : vector<1x256xf32>
    %c0_13 = arith.constant 0 : index
    %c0_14 = arith.constant 0 : index
    %41 = vector.load %arg3[%c0_13, %c0_14] : memref<1x256xf32, #tpu.memory_space<vmem>>, vector<1x256xf32>
    %42 = arith.mulf %26, %40 : vector<1x256xf32>
    %43 = arith.subf %41, %42 : vector<1x256xf32>
    %44 = vector.broadcast %40 : vector<1x256xf32> to vector<16x256xf32>
    %45 = arith.mulf %22, %44 : vector<16x256xf32>
    %46 = vector.broadcast %43 : vector<1x256xf32> to vector<16x256xf32>
    %47 = arith.addf %45, %46 : vector<16x256xf32>
    %cst_15 = arith.constant 5.000000e-01 : f32
    %48 = vector.broadcast %cst_15 : f32 to vector<16x256xf32>
    %49 = arith.mulf %48, %47 : vector<16x256xf32>
    %cst_16 = arith.constant 4.471500e-02 : f32
    %50 = vector.broadcast %cst_16 : f32 to vector<16x256xf32>
    %51 = arith.mulf %50, %47 : vector<16x256xf32>
    %52 = arith.mulf %51, %47 : vector<16x256xf32>
    %53 = arith.mulf %52, %47 : vector<16x256xf32>
    %54 = arith.addf %47, %53 : vector<16x256xf32>
    %cst_17 = arith.constant 0.797884583 : f32
    %55 = vector.broadcast %cst_17 : f32 to vector<16x256xf32>
    %56 = arith.mulf %55, %54 : vector<16x256xf32>
    %57 = math.tanh %56 : vector<16x256xf32>
    %cst_18 = arith.constant 1.000000e+00 : f32
    %58 = vector.broadcast %cst_18 : f32 to vector<16x256xf32>
    %59 = arith.addf %58, %57 : vector<16x256xf32>
    %60 = arith.mulf %49, %59 : vector<16x256xf32>
    %c0_i32_19 = arith.constant 0 : i32
    %61 = tpu.memref_slice %arg15[%c0_i32_19] : memref<3x!tpu.dma_semaphore, #tpu.memory_space<semaphore_mem>> -> memref<1x!tpu.dma_semaphore, #tpu.memory_space<semaphore_mem>>
    %62 = tpu.memref_squeeze %61 : memref<1x!tpu.dma_semaphore, #tpu.memory_space<semaphore_mem>> -> memref<!tpu.dma_semaphore, #tpu.memory_space<semaphore_mem>>
    tpu.wait_dma2 semaphore(%62 : memref<!tpu.dma_semaphore, #tpu.memory_space<semaphore_mem>>) src(%arg8 : memref<256x256xbf16, #tpu.memory_space<any>>) dst(%arg12 : memref<256x256xbf16, #tpu.memory_space<vmem>>)
    %c0_20 = arith.constant 0 : index
    %c0_21 = arith.constant 0 : index
    %63 = vector.load %arg12[%c0_20, %c0_21] : memref<256x256xbf16, #tpu.memory_space<vmem>>, vector<256x256xbf16>
    %64 = arith.truncf %60 : vector<16x256xf32> to vector<16x256xbf16>
    %cst_22 = arith.constant dense<0.000000e+00> : vector<16x256xf32>
    %65 = tpu.matmul %64, %63, %cst_22 {dimension_numbers = #tpu.dot_dimension_numbers<[1], [0], [0], [1], [0, 0, 1, 1], [], []>} : vector<16x256xbf16>, vector<256x256xbf16>, vector<16x256xf32> -> vector<16x256xf32>
    %66 = vector.broadcast %19 : vector<16x1xf32> to vector<16x256xf32>
    %67 = arith.mulf %65, %66 : vector<16x256xf32>
    %cst_23 = arith.constant dense<0.000000e+00> : vector<256xf32>
    %68 = vector.multi_reduction <add>, %67, %cst_23 [0] : vector<16x256xf32> to vector<256xf32>
    %69 = vector.shape_cast %68 : vector<256xf32> to vector<1x256xf32>
    %cst_24 = arith.constant 0.0833333358 : f32
    %70 = vector.broadcast %cst_24 : f32 to vector<1x256xf32>
    %71 = arith.mulf %69, %70 : vector<1x256xf32>
    %72 = arith.mulf %67, %67 : vector<16x256xf32>
    %cst_25 = arith.constant dense<0.000000e+00> : vector<256xf32>
    %73 = vector.multi_reduction <add>, %72, %cst_25 [0] : vector<16x256xf32> to vector<256xf32>
    %74 = vector.shape_cast %73 : vector<256xf32> to vector<1x256xf32>
    %cst_26 = arith.constant 0.0833333358 : f32
    %75 = vector.broadcast %cst_26 : f32 to vector<1x256xf32>
    %76 = arith.mulf %74, %75 : vector<1x256xf32>
    %77 = arith.mulf %71, %71 : vector<1x256xf32>
    %78 = arith.subf %76, %77 : vector<1x256xf32>
    %cst_27 = arith.constant 0.000000e+00 : f32
    %79 = vector.broadcast %cst_27 : f32 to vector<1x256xf32>
    %80 = arith.maximumf %78, %79 : vector<1x256xf32>
    %c0_28 = arith.constant 0 : index
    %c0_29 = arith.constant 0 : index
    %81 = vector.load %arg4[%c0_28, %c0_29] : memref<1x256xf32, #tpu.memory_space<vmem>>, vector<1x256xf32>
    %cst_30 = arith.constant 9.99999974E-6 : f32
    %82 = vector.broadcast %cst_30 : f32 to vector<1x256xf32>
    %83 = arith.addf %80, %82 : vector<1x256xf32>
    %84 = math.rsqrt %83 : vector<1x256xf32>
    %85 = arith.mulf %81, %84 : vector<1x256xf32>
    %c0_31 = arith.constant 0 : index
    %c0_32 = arith.constant 0 : index
    %86 = vector.load %arg5[%c0_31, %c0_32] : memref<1x256xf32, #tpu.memory_space<vmem>>, vector<1x256xf32>
    %87 = arith.mulf %71, %85 : vector<1x256xf32>
    %88 = arith.subf %86, %87 : vector<1x256xf32>
    %89 = vector.broadcast %85 : vector<1x256xf32> to vector<16x256xf32>
    %90 = arith.mulf %65, %89 : vector<16x256xf32>
    %91 = vector.broadcast %88 : vector<1x256xf32> to vector<16x256xf32>
    %92 = arith.addf %90, %91 : vector<16x256xf32>
    %cst_33 = arith.constant 5.000000e-01 : f32
    %93 = vector.broadcast %cst_33 : f32 to vector<16x256xf32>
    %94 = arith.mulf %93, %92 : vector<16x256xf32>
    %cst_34 = arith.constant 4.471500e-02 : f32
    %95 = vector.broadcast %cst_34 : f32 to vector<16x256xf32>
    %96 = arith.mulf %95, %92 : vector<16x256xf32>
    %97 = arith.mulf %96, %92 : vector<16x256xf32>
    %98 = arith.mulf %97, %92 : vector<16x256xf32>
    %99 = arith.addf %92, %98 : vector<16x256xf32>
    %cst_35 = arith.constant 0.797884583 : f32
    %100 = vector.broadcast %cst_35 : f32 to vector<16x256xf32>
    %101 = arith.mulf %100, %99 : vector<16x256xf32>
    %102 = math.tanh %101 : vector<16x256xf32>
    %cst_36 = arith.constant 1.000000e+00 : f32
    %103 = vector.broadcast %cst_36 : f32 to vector<16x256xf32>
    %104 = arith.addf %103, %102 : vector<16x256xf32>
    %105 = arith.mulf %94, %104 : vector<16x256xf32>
    %c1_i32_37 = arith.constant 1 : i32
    %106 = tpu.memref_slice %arg15[%c1_i32_37] : memref<3x!tpu.dma_semaphore, #tpu.memory_space<semaphore_mem>> -> memref<1x!tpu.dma_semaphore, #tpu.memory_space<semaphore_mem>>
    %107 = tpu.memref_squeeze %106 : memref<1x!tpu.dma_semaphore, #tpu.memory_space<semaphore_mem>> -> memref<!tpu.dma_semaphore, #tpu.memory_space<semaphore_mem>>
    tpu.wait_dma2 semaphore(%107 : memref<!tpu.dma_semaphore, #tpu.memory_space<semaphore_mem>>) src(%arg9 : memref<256x256xbf16, #tpu.memory_space<any>>) dst(%arg13 : memref<256x256xbf16, #tpu.memory_space<vmem>>)
    %c0_38 = arith.constant 0 : index
    %c0_39 = arith.constant 0 : index
    %108 = vector.load %arg13[%c0_38, %c0_39] : memref<256x256xbf16, #tpu.memory_space<vmem>>, vector<256x256xbf16>
    %109 = arith.truncf %105 : vector<16x256xf32> to vector<16x256xbf16>
    %cst_40 = arith.constant dense<0.000000e+00> : vector<16x256xf32>
    %110 = tpu.matmul %109, %108, %cst_40 {dimension_numbers = #tpu.dot_dimension_numbers<[1], [0], [0], [1], [0, 0, 1, 1], [], []>} : vector<16x256xbf16>, vector<256x256xbf16>, vector<16x256xf32> -> vector<16x256xf32>
    %111 = vector.broadcast %19 : vector<16x1xf32> to vector<16x256xf32>
    %112 = arith.mulf %110, %111 : vector<16x256xf32>
    %cst_41 = arith.constant dense<0.000000e+00> : vector<256xf32>
    %113 = vector.multi_reduction <add>, %112, %cst_41 [0] : vector<16x256xf32> to vector<256xf32>
    %114 = vector.shape_cast %113 : vector<256xf32> to vector<1x256xf32>
    %cst_42 = arith.constant 0.0833333358 : f32
    %115 = vector.broadcast %cst_42 : f32 to vector<1x256xf32>
    %116 = arith.mulf %114, %115 : vector<1x256xf32>
    %117 = arith.mulf %112, %112 : vector<16x256xf32>
    %cst_43 = arith.constant dense<0.000000e+00> : vector<256xf32>
    %118 = vector.multi_reduction <add>, %117, %cst_43 [0] : vector<16x256xf32> to vector<256xf32>
    %119 = vector.shape_cast %118 : vector<256xf32> to vector<1x256xf32>
    %cst_44 = arith.constant 0.0833333358 : f32
    %120 = vector.broadcast %cst_44 : f32 to vector<1x256xf32>
    %121 = arith.mulf %119, %120 : vector<1x256xf32>
    %122 = arith.mulf %116, %116 : vector<1x256xf32>
    %123 = arith.subf %121, %122 : vector<1x256xf32>
    %cst_45 = arith.constant 0.000000e+00 : f32
    %124 = vector.broadcast %cst_45 : f32 to vector<1x256xf32>
    %125 = arith.maximumf %123, %124 : vector<1x256xf32>
    %c0_46 = arith.constant 0 : index
    %c0_47 = arith.constant 0 : index
    %126 = vector.load %arg6[%c0_46, %c0_47] : memref<1x256xf32, #tpu.memory_space<vmem>>, vector<1x256xf32>
    %cst_48 = arith.constant 9.99999974E-6 : f32
    %127 = vector.broadcast %cst_48 : f32 to vector<1x256xf32>
    %128 = arith.addf %125, %127 : vector<1x256xf32>
    %129 = math.rsqrt %128 : vector<1x256xf32>
    %130 = arith.mulf %126, %129 : vector<1x256xf32>
    %c0_49 = arith.constant 0 : index
    %c0_50 = arith.constant 0 : index
    %131 = vector.load %arg7[%c0_49, %c0_50] : memref<1x256xf32, #tpu.memory_space<vmem>>, vector<1x256xf32>
    %132 = arith.mulf %116, %130 : vector<1x256xf32>
    %133 = arith.subf %131, %132 : vector<1x256xf32>
    %134 = vector.broadcast %130 : vector<1x256xf32> to vector<16x256xf32>
    %135 = arith.mulf %110, %134 : vector<16x256xf32>
    %136 = vector.broadcast %133 : vector<1x256xf32> to vector<16x256xf32>
    %137 = arith.addf %135, %136 : vector<16x256xf32>
    %cst_51 = arith.constant 5.000000e-01 : f32
    %138 = vector.broadcast %cst_51 : f32 to vector<16x256xf32>
    %139 = arith.mulf %138, %137 : vector<16x256xf32>
    %cst_52 = arith.constant 4.471500e-02 : f32
    %140 = vector.broadcast %cst_52 : f32 to vector<16x256xf32>
    %141 = arith.mulf %140, %137 : vector<16x256xf32>
    %142 = arith.mulf %141, %137 : vector<16x256xf32>
    %143 = arith.mulf %142, %137 : vector<16x256xf32>
    %144 = arith.addf %137, %143 : vector<16x256xf32>
    %cst_53 = arith.constant 0.797884583 : f32
    %145 = vector.broadcast %cst_53 : f32 to vector<16x256xf32>
    %146 = arith.mulf %145, %144 : vector<16x256xf32>
    %147 = math.tanh %146 : vector<16x256xf32>
    %cst_54 = arith.constant 1.000000e+00 : f32
    %148 = vector.broadcast %cst_54 : f32 to vector<16x256xf32>
    %149 = arith.addf %148, %147 : vector<16x256xf32>
    %150 = arith.mulf %139, %149 : vector<16x256xf32>
    %c2_i32_55 = arith.constant 2 : i32
    %151 = tpu.memref_slice %arg15[%c2_i32_55] : memref<3x!tpu.dma_semaphore, #tpu.memory_space<semaphore_mem>> -> memref<1x!tpu.dma_semaphore, #tpu.memory_space<semaphore_mem>>
    %152 = tpu.memref_squeeze %151 : memref<1x!tpu.dma_semaphore, #tpu.memory_space<semaphore_mem>> -> memref<!tpu.dma_semaphore, #tpu.memory_space<semaphore_mem>>
    tpu.wait_dma2 semaphore(%152 : memref<!tpu.dma_semaphore, #tpu.memory_space<semaphore_mem>>) src(%arg10 : memref<256x128xbf16, #tpu.memory_space<any>>) dst(%arg14 : memref<256x128xbf16, #tpu.memory_space<vmem>>)
    %153 = arith.truncf %150 : vector<16x256xf32> to vector<16x256xbf16>
    %c0_56 = arith.constant 0 : index
    %c0_57 = arith.constant 0 : index
    %154 = vector.load %arg14[%c0_56, %c0_57] : memref<256x128xbf16, #tpu.memory_space<vmem>>, vector<256x128xbf16>
    %cst_58 = arith.constant dense<0.000000e+00> : vector<16x128xf32>
    %155 = tpu.matmul %153, %154, %cst_58 {dimension_numbers = #tpu.dot_dimension_numbers<[1], [0], [0], [1], [0, 0, 1, 1], [], []>} : vector<16x256xbf16>, vector<256x128xbf16>, vector<16x128xf32> -> vector<16x128xf32>
    %c0_59 = arith.constant 0 : index
    %c0_60 = arith.constant 0 : index
    %156 = vector.load %arg11[%c0_59, %c0_60] : memref<16x128xf32, #tpu.memory_space<vmem>>, vector<16x128xf32>
    tpu.vector_store %arg11[%c0_59, %c0_60], %155 {strides = array<i32>} : memref<16x128xf32, #tpu.memory_space<vmem>>, vector<16x128xf32>,
    return
  }
}

</mosaic_0001>

<bundles_post_ra>
// kernel: tpu_custom_call.1
= control target key start
LH: loop header
LB: loop body
LE: loop exit
PB: predicated region body
PF: predicated region fallthrough
CT: control target
= control target key end

     0   :  { %16 = vsyncpa [#allocation7], 0  ;;  %s2127_s0 = inlined_call_operand.hbm [shape: f32[16,128], index: 0, kind: input, shape index: {}]   ;;  %s2128_s1 = inlined_call_operand.hbm [shape: bf16[128,256], index: 1, kind: input, shape index: {}]   ;;  %s2129_s2 = inlined_call_operand.vmem [shape: f32[1,256], index: 2, kind: input, shape index: {}]   ;;  %s2130_s3 = inlined_call_operand.vmem [shape: f32[1,256], index: 3, kind: input, shape index: {}]   ;;  %s2131_s4 = inlined_call_operand.vmem [shape: f32[1,256], index: 4, kind: input, shape index: {}]   ;;  %s2132_s5 = inlined_call_operand.vmem [shape: f32[1,256], index: 5, kind: input, shape index: {}]   ;;  %s2133_s6 = inlined_call_operand.vmem [shape: f32[1,256], index: 6, kind: input, shape index: {}]   ;;  %s2134_s7 = inlined_call_operand.vmem [shape: f32[1,256], index: 7, kind: input, shape index: {}]   ;;  %s2135_s8 = inlined_call_operand.hbm [shape: bf16[256,256], index: 8, kind: input, shape index: {}]   ;;  %s2136_s9 = inlined_call_operand.hbm [shape: bf16[256,256], index: 9, kind: input, shape index: {}]   ;;  %s2137_s10 = inlined_call_operand.hbm [shape: bf16[256,128], index: 10, kind: input, shape index: {}]   ;;  %s2138_s11 = inlined_call_operand.hbm [shape: f32[16,128], index: 11, kind: output, shape index: {}]  }
   0x1   :  { %17 = vsyncpa [#allocation10], 0 }
   0x2   :  { %18 = vsyncpa [#allocation8], 0  ;;  %s1883_s17 = smov [#allocation6]  }
   0x3   :  { %s24_s18 = sshll.u32 %s1883_s17, 4  ;;  %s25_s18 = int_to_ptr.vmem [resolvable:$true] %s24_s18 }
   0x4   :  { %s1759_s19 = scalar_lea.vmem %s25_s18, 256  ;;  %p1764_p1 = scmp.lt.s32.totalorder %s25_s18, %s25_s18 }
   0x5   :  { %p1760_p0 = scmp.ne.s32.totalorder %s25_s18, %s1759_s19  ;;  %p1765_p2 = scmp.lt.s32.totalorder %s1759_s19, %s1759_s19 }
   0x7   :  { %p1766_p3 = por %p1765_p2, %p1764_p1 }
   0x9   :  { %p1767_p4 = pnand %p1766_p3, %p1760_p0 }
   0xb   :  { %1770 = shalt.err (!%p1767_p4)
}
   0xc   :  { %s1884_s20 = smov 128   ;;  %s1885_s21 = smov 8  }
   0xd   :  { %30 = dma.hbm_to_vmem [thread:$0]  %s2127_s0, 256, %s25_s18, [#allocation7], %s1884_s20, %s1884_s20, %s1885_s21  }
   0xe   :  { %s1886_s24 = smov [#allocation9]  }
   0xf   :  { %s36_s25 = sshll.u32 %s1886_s24, 4  ;;  %s37_s25 = int_to_ptr.vmem [resolvable:$true] %s36_s25 }
  0x10   :  { %s1779_s26 = scalar_lea.vmem %s37_s25, 2048  ;;  %p1784_p6 = scmp.lt.s32.totalorder %s37_s25, %s37_s25 }
  0x11   :  { %p1780_p5 = scmp.ne.s32.totalorder %s37_s25, %s1779_s26  ;;  %p1785_p7 = scmp.lt.s32.totalorder %s1779_s26, %s1779_s26 }
  0x13   :  { %p1786_p8 = por %p1785_p7, %p1784_p6 }
  0x15   :  { %p1787_p9 = pnand %p1786_p8, %p1780_p5 }
  0x17   :  { %1790 = shalt.err (!%p1787_p9)
}
  0x18   :  { %42 = dma.hbm_to_vmem [thread:$0]  %s2128_s1, 2048, %s37_s25, [#allocation10], %s1884_s20, %s1884_s20, %s1885_s21  }
  0x19   :  { %1871 = dma.done.wait [#allocation7], 256  }
  0x1a   :  { %1872 = vsyncadd [#allocation7], 4294967040 }
  0x1b   :  { %1873 = dma.done.wait [#allocation10], 2048  }
  0x1c   :  { %1874 = vsyncadd [#allocation10], 4294965248  ;;  %v1966_v0 = vld [vmem:[#allocation6] sm:$0xff]  ;;  %v1968_v1 = vld [vmem:[#allocation6 + $0x8] sm:$0xff]  ;;  %v1887_v16 = vmov 0   ;;  %v125_v40 = vlaneseq  ;;  %v1888_v43 = vmov 0.0  }
  0x1d   :  { %v99_v2 = vmul.f32 %v1966_v0, %v1966_v0  ;;  %v100_v3 = vmul.f32 %v1968_v1, %v1968_v1  ;;  %v1571_v4 = vld [vmem:[#allocation9 + $0x74] ss:$8 sps:$4 sm:$0xff]   ;;  %v1573_v5 = vld [vmem:[#allocation9 + $0x70] ss:$8 sps:$4 sm:$0xff]   ;;  %v1574_v6 = vld [vmem:[#allocation9 + $0x64] ss:$8 sps:$4 sm:$0xff]   ;;  %263 = vmatprep.mubr.bf16.mxu0 %v1887_v16 }
  0x1e   :  { %231 = vmatprep.subr.bf16.mxu0 %v1571_v4  ;;  %v1576_v7 = vld [vmem:[#allocation9 + $0x60] ss:$8 sps:$4 sm:$0xff]   ;;  %v1577_v8 = vld [vmem:[#allocation9 + $0x54] ss:$8 sps:$4 sm:$0xff]   ;;  %v1579_v9 = vld [vmem:[#allocation9 + $0x50] ss:$8 sps:$4 sm:$0xff]  }
  0x1f   :  { %101 = vadd.xlane.f32.xlu0 %v99_v2  ;;  %232 = vmatpush1.bf16.msra.mxu0 %v1573_v5  ;;  %v1580_v10 = vld [vmem:[#allocation9 + $0x44] ss:$8 sps:$4 sm:$0xff]   ;;  %v1582_v11 = vld [vmem:[#allocation9 + $0x40] ss:$8 sps:$4 sm:$0xff]   ;;  %v1583_v12 = vld [vmem:[#allocation9 + $0x34] ss:$8 sps:$4 sm:$0xff]  }
  0x20   :  { %233 = vmatprep.subr.bf16.mxu0 %v1574_v6  ;;  %v1585_v13 = vld [vmem:[#allocation9 + $0x30] ss:$8 sps:$4 sm:$0xff]   ;;  %v1586_v14 = vld [vmem:[#allocation9 + $0x24] ss:$8 sps:$4 sm:$0xff]   ;;  %v1588_v15 = vld [vmem:[#allocation9 + $0x20] ss:$8 sps:$4 sm:$0xff]  }
  0x21   :  { %v1589_v17 = vld [vmem:[#allocation9 + $0x14] ss:$8 sps:$4 sm:$0xff]   ;;  %v1591_v18 = vld [vmem:[#allocation9 + $0x10] ss:$8 sps:$4 sm:$0xff]   ;;  %v1592_v19 = vld [vmem:[#allocation9 + $0x4] ss:$8 sps:$4 sm:$0xff]  }
  0x22   :  { %v1594_v20 = vld [vmem:[#allocation9] ss:$8 sps:$4 sm:$0xff]   ;;  %v1976_v41 = vshrl.u32 %v125_v40, 7  ;;  %s1889_s0 = smov [#allocation2]   ;;  %s1890_s29 = smov [#allocation3]  }
  0x23   :  { %103 = vadd.xlane.f32.xlu0 %v100_v3  ;;  %234 = vmatpush1.bf16.msra.mxu0 %v1576_v7  ;;  %s69_s1 = sshll.u32 %s1889_s0, 4  ;;  %s81_s30 = sshll.u32 %s1890_s29, 4  ;;  %s70_s1 = int_to_ptr.vmem [resolvable:$true] %s69_s1  ;;  %s82_s30 = int_to_ptr.vmem [resolvable:$true] %s81_s30 }
  0x24   :  { %235 = vmatprep.subr.bf16.mxu0 %v1577_v8  ;;  %v127_v42 = vadd.s32 8, %v1976_v41  ;;  %s1799_s12 = scalar_lea.vmem %s70_s1, 4096  ;;  %p1804_p11 = scmp.lt.s32.totalorder %s70_s1, %s70_s1 }
  0x25   :  { %p1800_p10 = scmp.ne.s32.totalorder %s70_s1, %s1799_s12  ;;  %p1805_p12 = scmp.lt.s32.totalorder %s1799_s12, %s1799_s12 }
  0x26   :  { %vm129_vm4 = vcmp.lt.s32.totalorder %v127_v42, 12 }
  0x27   :  { %236 = vmatpush1.bf16.msra.mxu0 %v1579_v9  ;;  %v1979_v44 = vsel %vm129_vm4, 1.0, %v1888_v43  ;;  %p1806_p13 = por %p1805_p12, %p1804_p11 }
  0x28   :  { %237 = vmatprep.subr.bf16.mxu0 %v1580_v10 }
  0x29   :  { %p1807_p0 = pnand %p1806_p13, %p1800_p10 }
  0x2b   :  { %238 = vmatpush1.bf16.msra.mxu0 %v1582_v11 }
  0x2c   :  { %239 = vmatprep.subr.bf16.mxu0 %v1583_v12 }
  0x2f   :  { %240 = vmatpush1.bf16.msra.mxu0 %v1585_v13 }
  0x30   :  { %241 = vmatprep.subr.bf16.mxu0 %v1586_v14 }
  0x33   :  { %242 = vmatpush1.bf16.msra.mxu0 %v1588_v15 }
  0x34   :  { %243 = vmatprep.subr.bf16.mxu0 %v1589_v17 }
  0x37   :  { %244 = vmatpush1.bf16.msra.mxu0 %v1591_v18 }
  0x38   :  { %245 = vmatprep.subr.bf16.mxu0 %v1592_v19 }
  0x3b   :  { %246 = vmatpush1.bf16.msra.mxu0 %v1594_v20 }
  0xa8   :  { %v102_v21 = vpop.xlane.xlu0 %101 }
  0xa9   :  { %1595 = vrsqrt.f32 %v102_v21  ;;  %vm107_vm0 = vcmp.eq.f32.partialorder %v102_v21, inf  ;;  %v110_v25 = vand.u32 2147483648, %v102_v21  ;;  %vm109_vm1 = vcmp.eq.f32.partialorder %v102_v21, 0.0 }
  0xac   :  { %v104_v22 = vpop.xlane.xlu0 %103 }
  0xad   :  { %1597 = vrsqrt.f32 %v104_v22  ;;  %vm114_vm2 = vcmp.eq.f32.partialorder %v104_v22, inf  ;;  %v117_v31 = vand.u32 2147483648, %v104_v22  ;;  %vm116_vm3 = vcmp.eq.f32.partialorder %v104_v22, 0.0 }
  0xb6   :  { %v1596_v23 = vpop.eup %1595 }
  0xb7   :  { %v106_v24 = vmul.f32 %v1596_v23, %v102_v21 }
  0xb9   :  { %v108_v26 = vsel %vm107_vm0, %v102_v21, %v106_v24 }
  0xba   :  { %v1598_v27 = vpop.eup %1597  ;;  %v111_v28 = vsel %vm109_vm1, %v110_v25, %v108_v26 }
  0xbb   :  { %v119_v29 = vmax.f32 %v111_v28, 1e-12  ;;  %v113_v30 = vmul.f32 %v1598_v27, %v104_v22 }
  0xbd   :  { %v115_v32 = vsel %vm114_vm2, %v104_v22, %v113_v30  ;;  %1599 = vrcp.f32 %v119_v29 }
  0xbe   :  { %v118_v33 = vsel %vm116_vm3, %v117_v31, %v115_v32 }
  0xbf   :  { %v120_v34 = vmax.f32 %v118_v33, 1e-12 }
  0xc1   :  { %1601 = vrcp.f32 %v120_v34 }
  0xca   :  { %v1600_v35 = vpop.eup %1599 }
  0xcb   :  { %v122_v37 = vmul.f32 %v1600_v35, %v1966_v0 }
  0xce   :  { %v1602_v36 = vpop.eup %1601 }
  0xcf   :  { %v124_v38 = vmul.f32 %v1602_v36, %v1968_v1 }
  0xd1   :  { %v150_v39 = vpack.c.bf16 %v124_v38, %v122_v37 }
  0xd3   :  { %264 = vmatmul.mubr.bf16.vlgmr.msra.gmra.mxu0 %v150_v39 }
  0xd4   :  { %1810 = shalt.err (!%p1807_p0)  }
  0xd5   :  { %72 = dma.hbm_to_vmem [thread:$0]  %s2135_s8, 4096, %s70_s1, [#allocation5] }
  0xd6   :  { %s1819_s15 = scalar_lea.vmem %s82_s30, 4096  ;;  %p1824_p2 = scmp.lt.s32.totalorder %s82_s30, %s82_s30 }
  0xd7   :  { %p1820_p1 = scmp.ne.s32.totalorder %s82_s30, %s1819_s15  ;;  %p1825_p3 = scmp.lt.s32.totalorder %s1819_s15, %s1819_s15 }
  0xd9   :  { %p1826_p4 = por %p1825_p3, %p1824_p2 }
  0xdb   :  { %p1827_p5 = pnand %p1826_p4, %p1820_p1 }
  0xdd   :  { %1830 = shalt.err (!%p1827_p5)  }
  0xde   :  { %84 = dma.hbm_to_vmem [thread:$0]  %s2136_s9, 4096, %s82_s30, [#allocation5 + $0x1] }
  0xdf   :  { %s1891_s18 = smov [#allocation4]  }
  0xe0   :  { %s93_s19 = sshll.u32 %s1891_s18, 4  ;;  %s94_s19 = int_to_ptr.vmem [resolvable:$true] %s93_s19 }
  0xe1   :  { %s1839_s22 = scalar_lea.vmem %s94_s19, 2048  ;;  %p1844_p7 = scmp.lt.s32.totalorder %s94_s19, %s94_s19 }
  0xe2   :  { %p1840_p6 = scmp.ne.s32.totalorder %s94_s19, %s1839_s22  ;;  %p1845_p8 = scmp.lt.s32.totalorder %s1839_s22, %s1839_s22 }
  0xe4   :  { %p1846_p9 = por %p1845_p8, %p1844_p7 }
  0xe6   :  { %p1847_p10 = pnand %p1846_p9, %p1840_p6 }
  0xe8   :  { %1850 = shalt.err (!%p1847_p10)  }
  0xe9   :  { %96 = dma.hbm_to_vmem [thread:$0]  %s2137_s10, 2048, %s94_s19, [#allocation5 + $0x2]  ;;  %v1892_v29 = vmov 1966171168   ;;  %v316_v37 = vld [vmem:[%s2129_s2] sm:$0x3] }
  0xea   :  { %v325_v30 = vunpack.c.l.s4 %v1892_v29  ;;  %v2019_v39 = vsub.s32 0, %v1976_v41  ;;  %v2022_v40 = vsub.s32 1, %v1976_v41 }
  0xec   :  { %v326_v31 = vunpack.c.0.s8 %v325_v30 }
  0xee   :  { %v2011_v33 = vsub.s32 %v326_v31, %v1976_v41 }
 0x193   :  { %v1990_v45 = vpop.f32.mrf.mxu0 }
 0x194   :  { %v290_v48 = vmul.f32 %v1990_v45, %v1990_v45 }
 0x195   :  { %v1992_v46 = vpop.f32.mrf.mxu0 }
 0x196   :  { %v291_v51 = vmul.f32 %v1992_v46, %v1992_v46 }
 0x197   :  { %v1994_v47 = vpop.f32.mrf.mxu0 }
 0x198   :  { %v274_v49 = vadd.f32 %v1994_v47, %v1990_v45  ;;  %v292_v50 = vmul.f32 %v1994_v47, %v1994_v47 }
 0x199   :  { %v2004_v52 = vpop.f32.mrf.mxu0 }
 0x19a   :  { %v275_v53 = vrot.slane %v274_v49, 4  ;;  %v294_v54 = vadd.f32 %v292_v50, %v290_v48  ;;  %v281_v55 = vadd.f32 %v2004_v52, %v1992_v46  ;;  %v293_v56 = vmul.f32 %v2004_v52, %v2004_v52 }
 0x19c   :  { %v276_v57 = vadd.f32 %v275_v53, %v274_v49  ;;  %v295_v58 = vrot.slane %v294_v54, 4  ;;  %v282_v59 = vrot.slane %v281_v55, 4  ;;  %v301_v60 = vadd.f32 %v293_v56, %v291_v51 }
 0x19e   :  { %v277_v61 = vrot.slane %v276_v57, 2  ;;  %v296_v62 = vadd.f32 %v295_v58, %v294_v54  ;;  %v283_v63 = vadd.f32 %v282_v59, %v281_v55  ;;  %v302_v0 = vrot.slane %v301_v60, 4  ;;  %v340_v54 = vld [vmem:[%s2130_s3] sm:$0x3] }
 0x1a0   :  { %v278_v1 = vadd.f32 %v277_v61, %v276_v57  ;;  %v297_v2 = vrot.slane %v296_v62, 2  ;;  %v284_v3 = vrot.slane %v283_v63, 2  ;;  %v303_v4 = vadd.f32 %v302_v0, %v301_v60 }
 0x1a2   :  { %v279_v5 = vrot.slane %v278_v1, 1  ;;  %v298_v6 = vadd.f32 %v297_v2, %v296_v62  ;;  %v285_v7 = vadd.f32 %v284_v3, %v283_v63  ;;  %v304_v8 = vrot.slane %v303_v4, 2 }
 0x1a4   :  { %v280_v9 = vadd.f32 %v279_v5, %v278_v1  ;;  %v299_v10 = vrot.slane %v298_v6, 1  ;;  %v286_v11 = vrot.slane %v285_v7, 1  ;;  %v305_v12 = vadd.f32 %v304_v8, %v303_v4 }
 0x1a6   :  { %v288_v13 = vmul.f32 0.083333336, %v280_v9  ;;  %v300_v14 = vadd.f32 %v299_v10, %v298_v6  ;;  %v287_v15 = vadd.f32 %v286_v11, %v285_v7  ;;  %v306_v16 = vrot.slane %v305_v12, 1 }
 0x1a8   :  { %v308_v17 = vmul.f32 0.083333336, %v300_v14  ;;  %v310_v18 = vmul.f32 %v288_v13, %v288_v13  ;;  %v289_v19 = vmul.f32 0.083333336, %v287_v15  ;;  %v307_v20 = vadd.f32 %v306_v16, %v305_v12 }
 0x1aa   :  { %v312_v21 = vsub.f32 %v308_v17, %v310_v18  ;;  %v309_v22 = vmul.f32 0.083333336, %v307_v20  ;;  %v311_v23 = vmul.f32 %v289_v19, %v289_v19 }
 0x1ac   :  { %v314_v24 = vmax.f32 %v312_v21, 0.0  ;;  %v313_v25 = vsub.f32 %v309_v22, %v311_v23 }
 0x1ae   :  { %v317_v26 = vadd.f32 1e-05, %v314_v24  ;;  %v315_v27 = vmax.f32 %v313_v25, 0.0 }
 0x1b0   :  { %v318_v28 = vadd.f32 1e-05, %v315_v27  ;;  %1603 = vrsqrt.f32 %v317_v26 }
 0x1b2   :  { %1605 = vrsqrt.f32 %v318_v28 }
 0x1bd   :  { %v1604_v32 = vpop.eup %1603 }
 0x1bf   :  { %v1606_v34 = vpop.eup %1605 }
 0x1c0   :  { %v323_v35 = vcombine.low %v1604_v32, %v1606_v34 }
 0x1c2   :  { %v330_v36 = vrot.slane %v323_v35, %v2011_v33 }
 0x1c4   :  { %v337_v38 = vrot.slane %v330_v36, %v2011_v33 }
 0x1c6   :  { %v339_v42 = vmul.f32 %v337_v38, %v316_v37 }
 0x1c8   :  { %v345_v43 = vrot.slane %v339_v42, %v2019_v39  ;;  %v349_v48 = vrot.slane %v339_v42, %v2022_v40 }
 0x1ca   :  { %v352_v49 = vmul.f32 %v345_v43, %v288_v13  ;;  %v353_v50 = vmul.f32 %v349_v48, %v289_v19  ;;  %v373_v41 = vmul.f32 %v345_v43, %v1990_v45  ;;  %v374_v57 = vmul.f32 %v349_v48, %v1992_v46 }
 0x1cb   :  { %v375_v58 = vmul.f32 %v345_v43, %v1994_v47  ;;  %v376_v59 = vmul.f32 %v349_v48, %v2004_v52 }
 0x1cc   :  { %v356_v51 = vcombine.low %v352_v49, %v353_v50 }
 0x1ce   :  { %v363_v53 = vrot.slane %v356_v51, %v2011_v33 }
 0x1d0   :  { %v370_v55 = vrot.slane %v363_v53, %v2011_v33 }
 0x1d2   :  { %v372_v56 = vsub.f32 %v340_v54, %v370_v55 }
 0x1d4   :  { %v381_v60 = vrot.slane %v372_v56, %v2019_v39  ;;  %v385_v61 = vrot.slane %v372_v56, %v2022_v40 }
 0x1d6   :  { %v388_v62 = vadd.f32 %v381_v60, %v373_v41  ;;  %v389_v63 = vadd.f32 %v385_v61, %v374_v57  ;;  %v390_v0 = vadd.f32 %v381_v60, %v375_v58  ;;  %v391_v1 = vadd.f32 %v385_v61, %v376_v59 }
 0x1d8   :  { %v396_v2 = vmul.f32 0.044715, %v388_v62  ;;  %v397_v3 = vmul.f32 0.044715, %v389_v63  ;;  %v398_v4 = vmul.f32 0.044715, %v390_v0 }
 0x1d9   :  { %v399_v5 = vmul.f32 0.044715, %v391_v1  ;;  %v392_v20 = vmul.f32 0.5, %v388_v62  ;;  %v393_v23 = vmul.f32 0.5, %v389_v63  ;;  %v394_v26 = vmul.f32 0.5, %v390_v0 }
 0x1da   :  { %v400_v6 = vmul.f32 %v396_v2, %v388_v62  ;;  %v401_v45 = vmul.f32 %v397_v3, %v389_v63  ;;  %v402_v7 = vmul.f32 %v398_v4, %v390_v0  ;;  %v395_v29 = vmul.f32 0.5, %v391_v1 }
 0x1db   :  { %v403_v46 = vmul.f32 %v399_v5, %v391_v1 }
 0x1dc   :  { %v404_v8 = vmul.f32 %v400_v6, %v388_v62  ;;  %v405_v47 = vmul.f32 %v401_v45, %v389_v63  ;;  %v406_v9 = vmul.f32 %v402_v7, %v390_v0 }
 0x1dd   :  { %v407_v52 = vmul.f32 %v403_v46, %v391_v1 }
 0x1de   :  { %v408_v10 = vadd.f32 %v404_v8, %v388_v62  ;;  %v409_v11 = vadd.f32 %v405_v47, %v389_v63  ;;  %v410_v12 = vadd.f32 %v406_v9, %v390_v0 }
 0x1df   :  { %v411_v13 = vadd.f32 %v407_v52, %v391_v1 }
 0x1e0   :  { %v412_v14 = vmul.f32 0.7978846, %v408_v10  ;;  %v413_v15 = vmul.f32 0.7978846, %v409_v11  ;;  %v414_v16 = vmul.f32 0.7978846, %v410_v12 }
 0x1e1   :  { %v415_v17 = vmul.f32 0.7978846, %v411_v13 }
 0x1e2   :  { %1607 = vtanh.f32 %v412_v14 }
 0x1e3   :  { %1609 = vtanh.f32 %v413_v15 }
 0x1e4   :  { %1611 = vtanh.f32 %v414_v16 }
 0x1e5   :  { %1613 = vtanh.f32 %v415_v17 }
 0x1ef   :  { %v1608_v18 = vpop.eup %1607 }
 0x1f0   :  { %v1610_v19 = vpop.eup %1609  ;;  %v420_v21 = vadd.f32 1.0, %v1608_v18 }
 0x1f1   :  { %v1612_v22 = vpop.eup %1611  ;;  %v421_v24 = vadd.f32 1.0, %v1610_v19 }
 0x1f2   :  { %v1614_v25 = vpop.eup %1613  ;;  %v422_v27 = vadd.f32 1.0, %v1612_v22  ;;  %v2037_v28 = vmul.f32 %v420_v21, %v392_v20 }
 0x1f3   :  { %v423_v30 = vadd.f32 1.0, %v1614_v25  ;;  %v425_v31 = vmul.f32 %v421_v24, %v393_v23 }
 0x1f4   :  { %v2039_v32 = vmul.f32 %v422_v27, %v394_v26 }
 0x1f5   :  { %v427_v34 = vmul.f32 %v423_v30, %v395_v29 }
 0x1f6   :  { %1875 = dma.done.wait [#allocation5], 4096 }
 0x1f7   :  { %1876 = vsyncadd [#allocation5], 4294963200  ;;  %v465_v35 = vpack.c.bf16 %v427_v34, %v425_v31  ;;  %v1615_v36 = vld [vmem:[#allocation2 + $0x74] ss:$8 sps:$4 sm:$0xff]   ;;  %v1617_v37 = vld [vmem:[#allocation2 + $0x70] ss:$8 sps:$4 sm:$0xff]   ;;  %v464_v47 = vpack.c.bf16 %v2039_v32, %v2037_v28 }
 0x1f8   :  { %626 = vmatprep.subr.bf16.mxu1 %v1615_v36  ;;  %v1618_v38 = vld [vmem:[#allocation2 + $0x64] ss:$8 sps:$4 sm:$0xff]   ;;  %v1620_v42 = vld [vmem:[#allocation2 + $0x60] ss:$8 sps:$4 sm:$0xff]   ;;  %v1621_v43 = vld [vmem:[#allocation2 + $0x54] ss:$8 sps:$4 sm:$0xff]  }
 0x1f9   :  { %658 = vmatprep.mubr.bf16.mxu1 %v465_v35  ;;  %627 = vmatpush1.bf16.msra.mxu1 %v1617_v37  ;;  %v1623_v48 = vld [vmem:[#allocation2 + $0x50] ss:$8 sps:$4 sm:$0xff]   ;;  %v1624_v49 = vld [vmem:[#allocation2 + $0x44] ss:$8 sps:$4 sm:$0xff]   ;;  %v1626_v50 = vld [vmem:[#allocation2 + $0x40] ss:$8 sps:$4 sm:$0xff]  }
 0x1fa   :  { %628 = vmatprep.subr.bf16.mxu1 %v1618_v38  ;;  %v1627_v51 = vld [vmem:[#allocation2 + $0x34] ss:$8 sps:$4 sm:$0xff]   ;;  %v1629_v53 = vld [vmem:[#allocation2 + $0x30] ss:$8 sps:$4 sm:$0xff]   ;;  %v1630_v54 = vld [vmem:[#allocation2 + $0x24] ss:$8 sps:$4 sm:$0xff]  }
 0x1fb   :  { %v1632_v55 = vld [vmem:[#allocation2 + $0x20] ss:$8 sps:$4 sm:$0xff]   ;;  %v1633_v56 = vld [vmem:[#allocation2 + $0x14] ss:$8 sps:$4 sm:$0xff]   ;;  %v1635_v41 = vld [vmem:[#allocation2 + $0x10] ss:$8 sps:$4 sm:$0xff]  }
 0x1fc   :  { %v1636_v57 = vld [vmem:[#allocation2 + $0x4] ss:$8 sps:$4 sm:$0xff]   ;;  %v1638_v58 = vld [vmem:[#allocation2] ss:$8 sps:$4 sm:$0xff]   ;;  %v1639_v59 = vld [vmem:[#allocation2 + $0xf4] ss:$8 sps:$4 sm:$0xff]  }
 0x1fd   :  { %629 = vmatpush1.bf16.msra.mxu1 %v1620_v42  ;;  %v1641_v60 = vld [vmem:[#allocation2 + $0xf0] ss:$8 sps:$4 sm:$0xff]   ;;  %v1642_v61 = vld [vmem:[#allocation2 + $0xe4] ss:$8 sps:$4 sm:$0xff]   ;;  %v1644_v62 = vld [vmem:[#allocation2 + $0xe0] ss:$8 sps:$4 sm:$0xff]  }
 0x1fe   :  { %630 = vmatprep.subr.bf16.mxu1 %v1621_v43  ;;  %v1645_v63 = vld [vmem:[#allocation2 + $0xd4] ss:$8 sps:$4 sm:$0xff]   ;;  %v1647_v0 = vld [vmem:[#allocation2 + $0xd0] ss:$8 sps:$4 sm:$0xff]   ;;  %v1648_v1 = vld [vmem:[#allocation2 + $0xc4] ss:$8 sps:$4 sm:$0xff]  }
 0x1ff   :  { %v1650_v2 = vld [vmem:[#allocation2 + $0xc0] ss:$8 sps:$4 sm:$0xff]   ;;  %v1651_v3 = vld [vmem:[#allocation2 + $0xb4] ss:$8 sps:$4 sm:$0xff]   ;;  %v1653_v4 = vld [vmem:[#allocation2 + $0xb0] ss:$8 sps:$4 sm:$0xff]  }
 0x200   :  { %v1654_v5 = vld [vmem:[#allocation2 + $0xa4] ss:$8 sps:$4 sm:$0xff]   ;;  %v1656_v6 = vld [vmem:[#allocation2 + $0xa0] ss:$8 sps:$4 sm:$0xff]   ;;  %v1657_v45 = vld [vmem:[#allocation2 + $0x94] ss:$8 sps:$4 sm:$0xff]  }
 0x201   :  { %631 = vmatpush1.bf16.msra.mxu1 %v1623_v48  ;;  %v1659_v7 = vld [vmem:[#allocation2 + $0x90] ss:$8 sps:$4 sm:$0xff]   ;;  %v1660_v46 = vld [vmem:[#allocation2 + $0x84] ss:$8 sps:$4 sm:$0xff]   ;;  %v1662_v8 = vld [vmem:[#allocation2 + $0x80] ss:$8 sps:$4 sm:$0xff]  }
 0x202   :  { %632 = vmatprep.subr.bf16.mxu1 %v1624_v49 }
 0x205   :  { %633 = vmatpush1.bf16.msra.mxu1 %v1626_v50 }
 0x206   :  { %634 = vmatprep.subr.bf16.mxu1 %v1627_v51 }
 0x209   :  { %635 = vmatpush1.bf16.msra.mxu1 %v1629_v53 }
 0x20a   :  { %636 = vmatprep.subr.bf16.mxu1 %v1630_v54 }
 0x20d   :  { %637 = vmatpush1.bf16.msra.mxu1 %v1632_v55 }
 0x20e   :  { %638 = vmatprep.subr.bf16.mxu1 %v1633_v56 }
 0x211   :  { %639 = vmatpush1.bf16.msra.mxu1 %v1635_v41 }
 0x212   :  { %640 = vmatprep.subr.bf16.mxu1 %v1636_v57 }
 0x215   :  { %641 = vmatpush1.bf16.msra.mxu1 %v1638_v58 }
 0x216   :  { %642 = vmatprep.subr.bf16.mxu1 %v1639_v59 }
 0x219   :  { %643 = vmatpush2.bf16.msra.mxu1 %v1641_v60 }
 0x21a   :  { %644 = vmatprep.subr.bf16.mxu1 %v1642_v61 }
 0x21d   :  { %645 = vmatpush2.bf16.msra.mxu1 %v1644_v62 }
 0x21e   :  { %646 = vmatprep.subr.bf16.mxu1 %v1645_v63 }
 0x221   :  { %647 = vmatpush2.bf16.msra.mxu1 %v1647_v0 }
 0x222   :  { %648 = vmatprep.subr.bf16.mxu1 %v1648_v1 }
 0x225   :  { %649 = vmatpush2.bf16.msra.mxu1 %v1650_v2 }
 0x226   :  { %650 = vmatprep.subr.bf16.mxu1 %v1651_v3 }
 0x229   :  { %651 = vmatpush2.bf16.msra.mxu1 %v1653_v4 }
 0x22a   :  { %652 = vmatprep.subr.bf16.mxu1 %v1654_v5 }
 0x22d   :  { %653 = vmatpush2.bf16.msra.mxu1 %v1656_v6  ;;  %v715_v6 = vld [vmem:[%s2131_s4] sm:$0x3] }
 0x22e   :  { %654 = vmatprep.subr.bf16.mxu1 %v1657_v45 }
 0x231   :  { %655 = vmatpush2.bf16.msra.mxu1 %v1659_v7 }
 0x232   :  { %656 = vmatprep.subr.bf16.mxu1 %v1660_v46 }
 0x235   :  { %657 = vmatpush2.bf16.msra.mxu1 %v1662_v8 }
 0x238   :  { %659 = vmatmul.mubr.bf16.vlgmr.msra.gmra.mxu1 %v464_v47 }
 0x2f8   :  { %v2043_v9 = vpop.f32.mrf.mxu1 }
 0x2f9   :  { %v689_v13 = vmul.f32 %v2043_v9, %v2043_v9 }
 0x2fa   :  { %v2045_v52 = vpop.f32.mrf.mxu1 }
 0x2fb   :  { %v690_v17 = vmul.f32 %v2045_v52, %v2045_v52 }
 0x2fc   :  { %v2047_v10 = vpop.f32.mrf.mxu1 }
 0x2fd   :  { %v671_v11 = vmul.f32 %v1979_v44, %v2047_v10 }
 0x2fe   :  { %v2051_v12 = vpop.f32.mrf.mxu1 }
 0x2ff   :  { %v673_v14 = vadd.f32 %v671_v11, %v2043_v9  ;;  %v691_v15 = vmul.f32 %v671_v11, %v671_v11  ;;  %v672_v16 = vmul.f32 %v1979_v44, %v2051_v12 }
 0x301   :  { %v674_v18 = vrot.slane %v673_v14, 4  ;;  %v693_v19 = vadd.f32 %v691_v15, %v689_v13  ;;  %v680_v20 = vadd.f32 %v672_v16, %v2045_v52  ;;  %v692_v21 = vmul.f32 %v672_v16, %v672_v16  ;;  %v739_v15 = vld [vmem:[%s2132_s5] sm:$0x3] }
 0x303   :  { %v675_v22 = vadd.f32 %v674_v18, %v673_v14  ;;  %v694_v23 = vrot.slane %v693_v19, 4  ;;  %v681_v24 = vrot.slane %v680_v20, 4  ;;  %v700_v25 = vadd.f32 %v692_v21, %v690_v17 }
 0x305   :  { %v676_v26 = vrot.slane %v675_v22, 2  ;;  %v695_v27 = vadd.f32 %v694_v23, %v693_v19  ;;  %v682_v28 = vadd.f32 %v681_v24, %v680_v20  ;;  %v701_v29 = vrot.slane %v700_v25, 4 }
 0x307   :  { %v677_v30 = vadd.f32 %v676_v26, %v675_v22  ;;  %v696_v31 = vrot.slane %v695_v27, 2  ;;  %v683_v32 = vrot.slane %v682_v28, 2  ;;  %v702_v34 = vadd.f32 %v701_v29, %v700_v25 }
 0x309   :  { %v678_v35 = vrot.slane %v677_v30, 1  ;;  %v697_v36 = vadd.f32 %v696_v31, %v695_v27  ;;  %v684_v37 = vadd.f32 %v683_v32, %v682_v28  ;;  %v703_v38 = vrot.slane %v702_v34, 2 }
 0x30b   :  { %v679_v42 = vadd.f32 %v678_v35, %v677_v30  ;;  %v698_v43 = vrot.slane %v697_v36, 1  ;;  %v685_v48 = vrot.slane %v684_v37, 1  ;;  %v704_v49 = vadd.f32 %v703_v38, %v702_v34 }
 0x30d   :  { %v687_v50 = vmul.f32 0.083333336, %v679_v42  ;;  %v699_v51 = vadd.f32 %v698_v43, %v697_v36  ;;  %v686_v53 = vadd.f32 %v685_v48, %v684_v37  ;;  %v705_v54 = vrot.slane %v704_v49, 1 }
 0x30f   :  { %v707_v55 = vmul.f32 0.083333336, %v699_v51  ;;  %v709_v56 = vmul.f32 %v687_v50, %v687_v50  ;;  %v688_v41 = vmul.f32 0.083333336, %v686_v53  ;;  %v706_v57 = vadd.f32 %v705_v54, %v704_v49 }
 0x311   :  { %v711_v58 = vsub.f32 %v707_v55, %v709_v56  ;;  %v708_v59 = vmul.f32 0.083333336, %v706_v57  ;;  %v710_v60 = vmul.f32 %v688_v41, %v688_v41 }
 0x313   :  { %v713_v61 = vmax.f32 %v711_v58, 0.0  ;;  %v712_v62 = vsub.f32 %v708_v59, %v710_v60 }
 0x315   :  { %v716_v63 = vadd.f32 1e-05, %v713_v61  ;;  %v714_v0 = vmax.f32 %v712_v62, 0.0 }
 0x317   :  { %v717_v1 = vadd.f32 1e-05, %v714_v0  ;;  %1663 = vrsqrt.f32 %v716_v63 }
 0x319   :  { %1665 = vrsqrt.f32 %v717_v1 }
 0x324   :  { %v1664_v2 = vpop.eup %1663 }
 0x326   :  { %v1666_v3 = vpop.eup %1665 }
 0x327   :  { %v722_v4 = vcombine.low %v1664_v2, %v1666_v3 }
 0x329   :  { %v729_v5 = vrot.slane %v722_v4, %v2011_v33 }
 0x32b   :  { %v736_v45 = vrot.slane %v729_v5, %v2011_v33 }
 0x32d   :  { %v738_v7 = vmul.f32 %v736_v45, %v715_v6 }
 0x32f   :  { %v744_v46 = vrot.slane %v738_v7, %v2019_v39  ;;  %v748_v8 = vrot.slane %v738_v7, %v2022_v40 }
 0x331   :  { %v751_v47 = vmul.f32 %v744_v46, %v687_v50  ;;  %v752_v11 = vmul.f32 %v748_v8, %v688_v41  ;;  %v772_v18 = vmul.f32 %v744_v46, %v2043_v9  ;;  %v773_v19 = vmul.f32 %v748_v8, %v2045_v52 }
 0x332   :  { %v774_v20 = vmul.f32 %v744_v46, %v2047_v10  ;;  %v775_v21 = vmul.f32 %v748_v8, %v2051_v12 }
 0x333   :  { %v755_v13 = vcombine.low %v751_v47, %v752_v11 }
 0x335   :  { %v762_v14 = vrot.slane %v755_v13, %v2011_v33 }
 0x337   :  { %v769_v16 = vrot.slane %v762_v14, %v2011_v33 }
 0x339   :  { %v771_v17 = vsub.f32 %v739_v15, %v769_v16 }
 0x33b   :  { %v780_v22 = vrot.slane %v771_v17, %v2019_v39  ;;  %v784_v23 = vrot.slane %v771_v17, %v2022_v40 }
 0x33d   :  { %v787_v24 = vadd.f32 %v780_v22, %v772_v18  ;;  %v788_v25 = vadd.f32 %v784_v23, %v773_v19  ;;  %v789_v26 = vadd.f32 %v780_v22, %v774_v20  ;;  %v790_v27 = vadd.f32 %v784_v23, %v775_v21 }
 0x33f   :  { %v795_v28 = vmul.f32 0.044715, %v787_v24  ;;  %v796_v29 = vmul.f32 0.044715, %v788_v25  ;;  %v797_v30 = vmul.f32 0.044715, %v789_v26 }
 0x340   :  { %v798_v31 = vmul.f32 0.044715, %v790_v27  ;;  %v791_v55 = vmul.f32 0.5, %v787_v24  ;;  %v792_v57 = vmul.f32 0.5, %v788_v25  ;;  %v793_v60 = vmul.f32 0.5, %v789_v26 }
 0x341   :  { %v799_v32 = vmul.f32 %v795_v28, %v787_v24  ;;  %v800_v9 = vmul.f32 %v796_v29, %v788_v25  ;;  %v801_v34 = vmul.f32 %v797_v30, %v789_v26  ;;  %v794_v63 = vmul.f32 0.5, %v790_v27 }
 0x342   :  { %v802_v52 = vmul.f32 %v798_v31, %v790_v27 }
 0x343   :  { %v803_v35 = vmul.f32 %v799_v32, %v787_v24  ;;  %v804_v10 = vmul.f32 %v800_v9, %v788_v25  ;;  %v805_v36 = vmul.f32 %v801_v34, %v789_v26 }
 0x344   :  { %v806_v12 = vmul.f32 %v802_v52, %v790_v27 }
 0x345   :  { %v807_v37 = vadd.f32 %v803_v35, %v787_v24  ;;  %v808_v38 = vadd.f32 %v804_v10, %v788_v25  ;;  %v809_v42 = vadd.f32 %v805_v36, %v789_v26 }
 0x346   :  { %v810_v43 = vadd.f32 %v806_v12, %v790_v27 }
 0x347   :  { %v811_v48 = vmul.f32 0.7978846, %v807_v37  ;;  %v812_v49 = vmul.f32 0.7978846, %v808_v38  ;;  %v813_v50 = vmul.f32 0.7978846, %v809_v42 }
 0x348   :  { %v814_v51 = vmul.f32 0.7978846, %v810_v43 }
 0x349   :  { %1667 = vtanh.f32 %v811_v48 }
 0x34a   :  { %1669 = vtanh.f32 %v812_v49 }
 0x34b   :  { %1671 = vtanh.f32 %v813_v50 }
 0x34c   :  { %1673 = vtanh.f32 %v814_v51 }
 0x356   :  { %v1668_v53 = vpop.eup %1667 }
 0x357   :  { %v1670_v54 = vpop.eup %1669  ;;  %v819_v56 = vadd.f32 1.0, %v1668_v53 }
 0x358   :  { %v1672_v41 = vpop.eup %1671  ;;  %v820_v58 = vadd.f32 1.0, %v1670_v54 }
 0x359   :  { %v1674_v59 = vpop.eup %1673  ;;  %v821_v61 = vadd.f32 1.0, %v1672_v41  ;;  %v2079_v62 = vmul.f32 %v819_v56, %v791_v55 }
 0x35a   :  { %v822_v0 = vadd.f32 1.0, %v1674_v59  ;;  %v824_v1 = vmul.f32 %v820_v58, %v792_v57 }
 0x35b   :  { %v2081_v2 = vmul.f32 %v821_v61, %v793_v60 }
 0x35c   :  { %v826_v3 = vmul.f32 %v822_v0, %v794_v63 }
 0x35d   :  { %1877 = dma.done.wait [#allocation5 + $0x1], 4096 }
 0x35e   :  { %1878 = vsyncadd [#allocation5 + $0x1], 4294963200  ;;  %v862_v4 = vpack.c.bf16 %v826_v3, %v824_v1  ;;  %v1675_v5 = vld [vmem:[#allocation3 + $0x74] ss:$8 sps:$4 sm:$0xff]   ;;  %v1677_v6 = vld [vmem:[#allocation3 + $0x70] ss:$8 sps:$4 sm:$0xff]   ;;  %v861_v10 = vpack.c.bf16 %v2081_v2, %v2079_v62 }
 0x35f   :  { %1023 = vmatprep.subr.bf16.mxu0 %v1675_v5  ;;  %v1678_v45 = vld [vmem:[#allocation3 + $0x64] ss:$8 sps:$4 sm:$0xff]   ;;  %v1680_v7 = vld [vmem:[#allocation3 + $0x60] ss:$8 sps:$4 sm:$0xff]   ;;  %v1681_v46 = vld [vmem:[#allocation3 + $0x54] ss:$8 sps:$4 sm:$0xff]  }
 0x360   :  { %1055 = vmatprep.mubr.bf16.mxu0 %v862_v4  ;;  %1024 = vmatpush1.bf16.msra.mxu0 %v1677_v6  ;;  %v1683_v8 = vld [vmem:[#allocation3 + $0x50] ss:$8 sps:$4 sm:$0xff]   ;;  %v1684_v47 = vld [vmem:[#allocation3 + $0x44] ss:$8 sps:$4 sm:$0xff]   ;;  %v1686_v11 = vld [vmem:[#allocation3 + $0x40] ss:$8 sps:$4 sm:$0xff]  }
 0x361   :  { %1025 = vmatprep.subr.bf16.mxu0 %v1678_v45  ;;  %v1687_v13 = vld [vmem:[#allocation3 + $0x34] ss:$8 sps:$4 sm:$0xff]   ;;  %v1689_v14 = vld [vmem:[#allocation3 + $0x30] ss:$8 sps:$4 sm:$0xff]   ;;  %v1690_v15 = vld [vmem:[#allocation3 + $0x24] ss:$8 sps:$4 sm:$0xff]  }
 0x362   :  { %v1692_v16 = vld [vmem:[#allocation3 + $0x20] ss:$8 sps:$4 sm:$0xff]   ;;  %v1693_v17 = vld [vmem:[#allocation3 + $0x14] ss:$8 sps:$4 sm:$0xff]   ;;  %v1695_v18 = vld [vmem:[#allocation3 + $0x10] ss:$8 sps:$4 sm:$0xff]  }
 0x363   :  { %v1696_v19 = vld [vmem:[#allocation3 + $0x4] ss:$8 sps:$4 sm:$0xff]   ;;  %v1698_v20 = vld [vmem:[#allocation3] ss:$8 sps:$4 sm:$0xff]   ;;  %v1699_v21 = vld [vmem:[#allocation3 + $0xf4] ss:$8 sps:$4 sm:$0xff]  }
 0x364   :  { %1026 = vmatpush1.bf16.msra.mxu0 %v1680_v7  ;;  %v1701_v22 = vld [vmem:[#allocation3 + $0xf0] ss:$8 sps:$4 sm:$0xff]   ;;  %v1702_v23 = vld [vmem:[#allocation3 + $0xe4] ss:$8 sps:$4 sm:$0xff]   ;;  %v1704_v24 = vld [vmem:[#allocation3 + $0xe0] ss:$8 sps:$4 sm:$0xff]  }
 0x365   :  { %1027 = vmatprep.subr.bf16.mxu0 %v1681_v46  ;;  %v1705_v25 = vld [vmem:[#allocation3 + $0xd4] ss:$8 sps:$4 sm:$0xff]   ;;  %v1707_v26 = vld [vmem:[#allocation3 + $0xd0] ss:$8 sps:$4 sm:$0xff]   ;;  %v1708_v27 = vld [vmem:[#allocation3 + $0xc4] ss:$8 sps:$4 sm:$0xff]  }
 0x366   :  { %v1710_v28 = vld [vmem:[#allocation3 + $0xc0] ss:$8 sps:$4 sm:$0xff]   ;;  %v1711_v29 = vld [vmem:[#allocation3 + $0xb4] ss:$8 sps:$4 sm:$0xff]   ;;  %v1713_v30 = vld [vmem:[#allocation3 + $0xb0] ss:$8 sps:$4 sm:$0xff]  }
 0x367   :  { %v1714_v31 = vld [vmem:[#allocation3 + $0xa4] ss:$8 sps:$4 sm:$0xff]   ;;  %v1716_v32 = vld [vmem:[#allocation3 + $0xa0] ss:$8 sps:$4 sm:$0xff]   ;;  %v1717_v9 = vld [vmem:[#allocation3 + $0x94] ss:$8 sps:$4 sm:$0xff]  }
 0x368   :  { %1028 = vmatpush1.bf16.msra.mxu0 %v1683_v8  ;;  %v1719_v34 = vld [vmem:[#allocation3 + $0x90] ss:$8 sps:$4 sm:$0xff]   ;;  %v1720_v52 = vld [vmem:[#allocation3 + $0x84] ss:$8 sps:$4 sm:$0xff]   ;;  %v1722_v35 = vld [vmem:[#allocation3 + $0x80] ss:$8 sps:$4 sm:$0xff]  }
 0x369   :  { %1029 = vmatprep.subr.bf16.mxu0 %v1684_v47 }
 0x36c   :  { %1030 = vmatpush1.bf16.msra.mxu0 %v1686_v11 }
 0x36d   :  { %1031 = vmatprep.subr.bf16.mxu0 %v1687_v13 }
 0x370   :  { %1032 = vmatpush1.bf16.msra.mxu0 %v1689_v14 }
 0x371   :  { %1033 = vmatprep.subr.bf16.mxu0 %v1690_v15 }
 0x374   :  { %1034 = vmatpush1.bf16.msra.mxu0 %v1692_v16 }
 0x375   :  { %1035 = vmatprep.subr.bf16.mxu0 %v1693_v17 }
 0x378   :  { %1036 = vmatpush1.bf16.msra.mxu0 %v1695_v18 }
 0x379   :  { %1037 = vmatprep.subr.bf16.mxu0 %v1696_v19 }
 0x37c   :  { %1038 = vmatpush1.bf16.msra.mxu0 %v1698_v20 }
 0x37d   :  { %1039 = vmatprep.subr.bf16.mxu0 %v1699_v21 }
 0x380   :  { %1040 = vmatpush2.bf16.msra.mxu0 %v1701_v22 }
 0x381   :  { %1041 = vmatprep.subr.bf16.mxu0 %v1702_v23 }
 0x384   :  { %1042 = vmatpush2.bf16.msra.mxu0 %v1704_v24 }
 0x385   :  { %1043 = vmatprep.subr.bf16.mxu0 %v1705_v25 }
 0x388   :  { %1044 = vmatpush2.bf16.msra.mxu0 %v1707_v26 }
 0x389   :  { %1045 = vmatprep.subr.bf16.mxu0 %v1708_v27 }
 0x38c   :  { %1046 = vmatpush2.bf16.msra.mxu0 %v1710_v28 }
 0x38d   :  { %1047 = vmatprep.subr.bf16.mxu0 %v1711_v29 }
 0x390   :  { %1048 = vmatpush2.bf16.msra.mxu0 %v1713_v30 }
 0x391   :  { %1049 = vmatprep.subr.bf16.mxu0 %v1714_v31  ;;  %v1112_v31 = vld [vmem:[%s2133_s6] sm:$0x3] }
 0x394   :  { %1050 = vmatpush2.bf16.msra.mxu0 %v1716_v32 }
 0x395   :  { %1051 = vmatprep.subr.bf16.mxu0 %v1717_v9 }
 0x398   :  { %1052 = vmatpush2.bf16.msra.mxu0 %v1719_v34 }
 0x399   :  { %1053 = vmatprep.subr.bf16.mxu0 %v1720_v52 }
 0x39c   :  { %1054 = vmatpush2.bf16.msra.mxu0 %v1722_v35 }
 0x39f   :  { %1056 = vmatmul.mubr.bf16.vlgmr.msra.gmra.mxu0 %v861_v10 }
 0x45f   :  { %v2085_v36 = vpop.f32.mrf.mxu0 }
 0x460   :  { %v1086_v43 = vmul.f32 %v2085_v36, %v2085_v36 }
 0x461   :  { %v2087_v12 = vpop.f32.mrf.mxu0 }
 0x462   :  { %v1087_v51 = vmul.f32 %v2087_v12, %v2087_v12 }
 0x463   :  { %v2089_v37 = vpop.f32.mrf.mxu0 }
 0x464   :  { %v1068_v38 = vmul.f32 %v1979_v44, %v2089_v37 }
 0x465   :  { %v2093_v42 = vpop.f32.mrf.mxu0 }
 0x466   :  { %v1070_v48 = vadd.f32 %v1068_v38, %v2085_v36  ;;  %v1088_v49 = vmul.f32 %v1068_v38, %v1068_v38  ;;  %v1069_v50 = vmul.f32 %v1979_v44, %v2093_v42 }
 0x468   :  { %v1071_v53 = vrot.slane %v1070_v48, 4  ;;  %v1090_v54 = vadd.f32 %v1088_v49, %v1086_v43  ;;  %v1077_v55 = vadd.f32 %v1069_v50, %v2087_v12  ;;  %v1089_v56 = vmul.f32 %v1069_v50, %v1069_v50 }
 0x46a   :  { %v1072_v41 = vadd.f32 %v1071_v53, %v1070_v48  ;;  %v1091_v57 = vrot.slane %v1090_v54, 4  ;;  %v1078_v58 = vrot.slane %v1077_v55, 4  ;;  %v1097_v59 = vadd.f32 %v1089_v56, %v1087_v51  ;;  %v1136_v48 = vld [vmem:[%s2134_s7] sm:$0x3] }
 0x46c   :  { %v1073_v60 = vrot.slane %v1072_v41, 2  ;;  %v1092_v61 = vadd.f32 %v1091_v57, %v1090_v54  ;;  %v1079_v62 = vadd.f32 %v1078_v58, %v1077_v55  ;;  %v1098_v63 = vrot.slane %v1097_v59, 4 }
 0x46e   :  { %v1074_v0 = vadd.f32 %v1073_v60, %v1072_v41  ;;  %v1093_v1 = vrot.slane %v1092_v61, 2  ;;  %v1080_v2 = vrot.slane %v1079_v62, 2  ;;  %v1099_v44 = vadd.f32 %v1098_v63, %v1097_v59 }
 0x470   :  { %v1075_v3 = vrot.slane %v1074_v0, 1  ;;  %v1094_v4 = vadd.f32 %v1093_v1, %v1092_v61  ;;  %v1081_v5 = vadd.f32 %v1080_v2, %v1079_v62  ;;  %v1100_v6 = vrot.slane %v1099_v44, 2 }
 0x472   :  { %v1076_v45 = vadd.f32 %v1075_v3, %v1074_v0  ;;  %v1095_v7 = vrot.slane %v1094_v4, 1  ;;  %v1082_v46 = vrot.slane %v1081_v5, 1  ;;  %v1101_v8 = vadd.f32 %v1100_v6, %v1099_v44 }
 0x474   :  { %v1084_v47 = vmul.f32 0.083333336, %v1076_v45  ;;  %v1096_v11 = vadd.f32 %v1095_v7, %v1094_v4  ;;  %v1083_v13 = vadd.f32 %v1082_v46, %v1081_v5  ;;  %v1102_v14 = vrot.slane %v1101_v8, 1 }
 0x476   :  { %v1104_v15 = vmul.f32 0.083333336, %v1096_v11  ;;  %v1106_v16 = vmul.f32 %v1084_v47, %v1084_v47  ;;  %v1085_v17 = vmul.f32 0.083333336, %v1083_v13  ;;  %v1103_v18 = vadd.f32 %v1102_v14, %v1101_v8 }
 0x478   :  { %v1108_v19 = vsub.f32 %v1104_v15, %v1106_v16  ;;  %v1105_v20 = vmul.f32 0.083333336, %v1103_v18  ;;  %v1107_v21 = vmul.f32 %v1085_v17, %v1085_v17 }
 0x47a   :  { %v1110_v22 = vmax.f32 %v1108_v19, 0.0  ;;  %v1109_v23 = vsub.f32 %v1105_v20, %v1107_v21 }
 0x47c   :  { %v1113_v24 = vadd.f32 1e-05, %v1110_v22  ;;  %v1111_v25 = vmax.f32 %v1109_v23, 0.0 }
 0x47e   :  { %v1114_v26 = vadd.f32 1e-05, %v1111_v25  ;;  %1723 = vrsqrt.f32 %v1113_v24 }
 0x480   :  { %1725 = vrsqrt.f32 %v1114_v26 }
 0x48b   :  { %v1724_v27 = vpop.eup %1723 }
 0x48d   :  { %v1726_v28 = vpop.eup %1725 }
 0x48e   :  { %v1119_v29 = vcombine.low %v1724_v27, %v1726_v28 }
 0x490   :  { %v1126_v30 = vrot.slane %v1119_v29, %v2011_v33 }
 0x492   :  { %v1133_v32 = vrot.slane %v1126_v30, %v2011_v33 }
 0x494   :  { %v1135_v9 = vmul.f32 %v1133_v32, %v1112_v31 }
 0x496   :  { %v1141_v34 = vrot.slane %v1135_v9, %v2019_v39  ;;  %v1145_v52 = vrot.slane %v1135_v9, %v2022_v40 }
 0x498   :  { %v1148_v35 = vmul.f32 %v1141_v34, %v1084_v47  ;;  %v1149_v10 = vmul.f32 %v1145_v52, %v1085_v17  ;;  %v1169_v51 = vmul.f32 %v1141_v34, %v2085_v36  ;;  %v1170_v53 = vmul.f32 %v1145_v52, %v2087_v12 }
 0x499   :  { %v1171_v54 = vmul.f32 %v1141_v34, %v2089_v37  ;;  %v1172_v55 = vmul.f32 %v1145_v52, %v2093_v42 }
 0x49a   :  { %v1152_v38 = vcombine.low %v1148_v35, %v1149_v10 }
 0x49c   :  { %v1159_v43 = vrot.slane %v1152_v38, %v2011_v33 }
 0x49e   :  { %v1166_v49 = vrot.slane %v1159_v43, %v2011_v33 }
 0x4a0   :  { %v1168_v50 = vsub.f32 %v1136_v48, %v1166_v49 }
 0x4a2   :  { %v1177_v56 = vrot.slane %v1168_v50, %v2019_v39  ;;  %v1181_v41 = vrot.slane %v1168_v50, %v2022_v40 }
 0x4a4   :  { %v1184_v57 = vadd.f32 %v1177_v56, %v1169_v51  ;;  %v1185_v58 = vadd.f32 %v1181_v41, %v1170_v53  ;;  %v1186_v59 = vadd.f32 %v1177_v56, %v1171_v54  ;;  %v1187_v60 = vadd.f32 %v1181_v41, %v1172_v55 }
 0x4a6   :  { %v1192_v61 = vmul.f32 0.044715, %v1184_v57  ;;  %v1193_v62 = vmul.f32 0.044715, %v1185_v58  ;;  %v1194_v33 = vmul.f32 0.044715, %v1186_v59 }
 0x4a7   :  { %v1195_v63 = vmul.f32 0.044715, %v1187_v60  ;;  %v1188_v47 = vmul.f32 0.5, %v1184_v57  ;;  %v1189_v14 = vmul.f32 0.5, %v1185_v58  ;;  %v1190_v17 = vmul.f32 0.5, %v1186_v59 }
 0x4a8   :  { %v1196_v0 = vmul.f32 %v1192_v61, %v1184_v57  ;;  %v1197_v36 = vmul.f32 %v1193_v62, %v1185_v58  ;;  %v1198_v1 = vmul.f32 %v1194_v33, %v1186_v59  ;;  %v1191_v20 = vmul.f32 0.5, %v1187_v60 }
 0x4a9   :  { %v1199_v12 = vmul.f32 %v1195_v63, %v1187_v60 }
 0x4aa   :  { %v1200_v2 = vmul.f32 %v1196_v0, %v1184_v57  ;;  %v1201_v37 = vmul.f32 %v1197_v36, %v1185_v58  ;;  %v1202_v44 = vmul.f32 %v1198_v1, %v1186_v59 }
 0x4ab   :  { %v1203_v42 = vmul.f32 %v1199_v12, %v1187_v60 }
 0x4ac   :  { %v1204_v3 = vadd.f32 %v1200_v2, %v1184_v57  ;;  %v1205_v39 = vadd.f32 %v1201_v37, %v1185_v58  ;;  %v1206_v4 = vadd.f32 %v1202_v44, %v1186_v59 }
 0x4ad   :  { %v1207_v40 = vadd.f32 %v1203_v42, %v1187_v60 }
 0x4ae   :  { %v1208_v5 = vmul.f32 0.7978846, %v1204_v3  ;;  %v1209_v6 = vmul.f32 0.7978846, %v1205_v39  ;;  %v1210_v45 = vmul.f32 0.7978846, %v1206_v4 }
 0x4af   :  { %v1211_v7 = vmul.f32 0.7978846, %v1207_v40 }
 0x4b0   :  { %1727 = vtanh.f32 %v1208_v5 }
 0x4b1   :  { %1729 = vtanh.f32 %v1209_v6 }
 0x4b2   :  { %1731 = vtanh.f32 %v1210_v45 }
 0x4b3   :  { %1733 = vtanh.f32 %v1211_v7 }
 0x4bd   :  { %v1728_v46 = vpop.eup %1727 }
 0x4be   :  { %v1730_v8 = vpop.eup %1729  ;;  %v1216_v11 = vadd.f32 1.0, %v1728_v46 }
 0x4bf   :  { %v1732_v13 = vpop.eup %1731  ;;  %v1217_v15 = vadd.f32 1.0, %v1730_v8 }
 0x4c0   :  { %v1734_v16 = vpop.eup %1733  ;;  %v1218_v18 = vadd.f32 1.0, %v1732_v13  ;;  %v1220_v19 = vmul.f32 %v1216_v11, %v1188_v47 }
 0x4c1   :  { %v1219_v21 = vadd.f32 1.0, %v1734_v16  ;;  %v1221_v22 = vmul.f32 %v1217_v15, %v1189_v14 }
 0x4c2   :  { %v1222_v23 = vmul.f32 %v1218_v18, %v1190_v17 }
 0x4c3   :  { %v1223_v24 = vmul.f32 %v1219_v21, %v1191_v20 }
 0x4c4   :  { %1879 = dma.done.wait [#allocation5 + $0x2], 2048 }
 0x4c5   :  { %1880 = vsyncadd [#allocation5 + $0x2], 4294965248  ;;  %v1228_v25 = vpack.c.bf16 %v1223_v24, %v1221_v22  ;;  %v1735_v26 = vld [vmem:[#allocation4 + $0x78] sm:$0xff]   ;;  %v1737_v28 = vld [vmem:[#allocation4 + $0x70] sm:$0xff]   ;;  %v1227_v50 = vpack.c.bf16 %v1222_v23, %v1220_v19  ;;  %s1893_s6 = smov [#allocation11]  }
 0x4c6   :  { %v1736_v27 = vld [vmem:[#allocation4 + $0x38] sm:$0xff]   ;;  %1538 = vmatprep.subr.bf16.mxu1 %v1735_v26  ;;  %v1738_v29 = vld [vmem:[#allocation4 + $0x30] sm:$0xff]   ;;  %v1739_v30 = vld [vmem:[#allocation4 + $0x68] sm:$0xff]   ;;  %s1405_s7 = sshll.u32 %s1893_s6, 4  ;;  %s1406_s7 = int_to_ptr.vmem [resolvable:$true] %s1405_s7 }
 0x4c7   :  { %1389 = vmatprep.mubr.bf16.mxu1 %v1228_v25  ;;  %1539 = vmatpush3.bf16.msra.mxu1 %v1736_v27  ;;  %v1740_v31 = vld [vmem:[#allocation4 + $0x28] sm:$0xff]   ;;  %v1741_v32 = vld [vmem:[#allocation4 + $0x60] sm:$0xff]   ;;  %v1743_v34 = vld [vmem:[#allocation4 + $0x58] sm:$0xff]   ;;  %s1851_s1 = scalar_lea.vmem %s1406_s7, 256  ;;  %p1856_p12 = scmp.lt.s32.totalorder %s1406_s7, %s1406_s7 }
 0x4c8   :  { %1540 = vmatprep.subr.bf16.mxu1 %v1737_v28  ;;  %v1742_v9 = vld [vmem:[#allocation4 + $0x20] sm:$0xff]   ;;  %v1744_v52 = vld [vmem:[#allocation4 + $0x18] sm:$0xff]   ;;  %v1745_v35 = vld [vmem:[#allocation4 + $0x50] sm:$0xff]   ;;  %p1852_p11 = scmp.ne.s32.totalorder %s1406_s7, %s1851_s1  ;;  %p1857_p13 = scmp.lt.s32.totalorder %s1851_s1, %s1851_s1 }
 0x4c9   :  { %v1746_v10 = vld [vmem:[#allocation4 + $0x10] sm:$0xff]   ;;  %v1747_v38 = vld [vmem:[#allocation4 + $0x48] sm:$0xff]   ;;  %v1749_v48 = vld [vmem:[#allocation4 + $0x40] sm:$0xff]  }
 0x4ca   :  { %v1748_v43 = vld [vmem:[#allocation4 + $0x8] sm:$0xff]   ;;  %v1750_v49 = vld [vmem:[#allocation4] sm:$0xff]   ;;  %p1858_p0 = por %p1857_p13, %p1856_p12 }
 0x4cb   :  { %1541 = vmatpush3.bf16.msra.mxu1 %v1738_v29 }
 0x4cc   :  { %1542 = vmatprep.subr.bf16.mxu1 %v1739_v30  ;;  %p1859_p1 = pnand %p1858_p0, %p1852_p11 }
 0x4cf   :  { %1543 = vmatpush3.bf16.msra.mxu1 %v1740_v31 }
 0x4d0   :  { %1544 = vmatprep.subr.bf16.mxu1 %v1741_v32 }
 0x4d3   :  { %1545 = vmatpush3.bf16.msra.mxu1 %v1742_v9 }
 0x4d4   :  { %1546 = vmatprep.subr.bf16.mxu1 %v1743_v34 }
 0x4d7   :  { %1547 = vmatpush3.bf16.msra.mxu1 %v1744_v52 }
 0x4d8   :  { %1548 = vmatprep.subr.bf16.mxu1 %v1745_v35 }
 0x4db   :  { %1549 = vmatpush3.bf16.msra.mxu1 %v1746_v10 }
 0x4dc   :  { %1550 = vmatprep.subr.bf16.mxu1 %v1747_v38 }
 0x4df   :  { %1551 = vmatpush3.bf16.msra.mxu1 %v1748_v43 }
 0x4e0   :  { %1552 = vmatprep.subr.bf16.mxu1 %v1749_v48 }
 0x4e3   :  { %1553 = vmatpush3.bf16.msra.mxu1 %v1750_v49 }
 0x4e6   :  { %1390 = vmatmul.mubr.bf16.vlgmr.msra.gmra.mxu1 %v1227_v50 }
 0x5a6   :  { %v1554_v51 = vpop.f32.mrf.mxu1 }
 0x5a8   :  { %v1555_v53 = vpop.f32.mrf.mxu1 }
 0x5a9   :  { %v1556_v54 = vadd.f32 %v1555_v53, %v1554_v51 }
 0x5aa   :  { %v1557_v55 = vpop.f32.mrf.mxu1 }
 0x5ab   :  { %1398 = vst [vmem:[#allocation11] sm:$0xff] %v1556_v54 }
 0x5ac   :  { %v1558_v56 = vpop.f32.mrf.mxu1 }
 0x5ad   :  { %v1559_v41 = vadd.f32 %v1558_v56, %v1557_v55 }
 0x5af   :  { %1399 = vst [vmem:[#allocation11 + $0x8] sm:$0xff] %v1559_v41 }
 0x5b0   :  { %1862 = shalt.err (!%p1859_p1)
}
 0x5b1   :  { %1411 = dma.vmem_to_hbm [thread:$0]  %s1406_s7, 256, %s2138_s11, [#allocation8], %s1884_s20, %s1884_s20, %s1885_s21  }
 0x5b2   :  { %1881 = dma.done.wait [#allocation8], 256  }
 0x5b3   :  { %1882 = vsyncadd [#allocation8], 4294967040 }
 0x5b4   :  { %1415 = vsyncpa [#allocation7], 1 }
 0x5b5   :  { %1416 = vsyncpa [#allocation10], 1 }
 0x5b6   :  { %1417 = vsyncpa [#allocation8], 1 }
 0x5b7   :  { %1418 = vsyncmov [#allocation5] }
 0x5ba   :  { %s1419_s12 = vpop.sfrf %1418 }
 0x5bb   :  { %p1535_p2 = scmp.ne.s32.totalorder %s1419_s12, 0 }
 0x5bd   :  { %1423 = shalt.err (%p1535_p2)  }
 0x5be   :  { %1425 = vsyncmov [#allocation5 + $0x1] }
 0x5c1   :  { %s1426_s13 = vpop.sfrf %1425 }
 0x5c2   :  { %p1536_p3 = scmp.ne.s32.totalorder %s1426_s13, 0 }
 0x5c4   :  { %1430 = shalt.err (%p1536_p3)  }
 0x5c5   :  { %1432 = vsyncmov [#allocation5 + $0x2] }
 0x5c8   :  { %s1433_s14 = vpop.sfrf %1432 }
 0x5c9   :  { %p1537_p4 = scmp.ne.s32.totalorder %s1433_s14, 0 }
 0x5cb   :  { %1437 = shalt.err (%p1537_p4)  }

</bundles_post_ra>
